<compile_context>
chip_gen: v7x
topology: tpu7x:2x2x1
jax: 0.10.0
libtpu: 0.0.40
codegen_flags: <defaults>
</compile_context>

<pallas_src>
import functools

import jax
import jax.numpy as jnp
from jax import lax
from jax.experimental import pallas as pl
from jax.experimental.pallas import tpu as pltpu

_C1 = 0.01 ** 2
_C2 = 0.03 ** 2


def _ssim_kernel(x_ref, xt_ref, xb_ref, y_ref, yt_ref, yb_ref, o_ref, *, hb):
    """One (image, row-tile) step.  Main refs: (TH, W); halo refs: (hb, W)."""
    r = pl.program_id(1)
    nr = pl.num_programs(1)
    TH, W = x_ref.shape

    x = x_ref[...].astype(jnp.float32)
    y = y_ref[...].astype(jnp.float32)

    # Neighbour rows just above / below this tile, shape (1, W).  At the image
    # border ReflectionPad2d(1) reflects to row 1 / row H-2, which live inside
    # this tile; otherwise they come from the 8-row halo blocks.
    x_t = jnp.where(r == 0, x[1:2, :], xt_ref[hb - 1:hb, :].astype(jnp.float32))
    y_t = jnp.where(r == 0, y[1:2, :], yt_ref[hb - 1:hb, :].astype(jnp.float32))
    x_b = jnp.where(r == nr - 1, x[TH - 2:TH - 1, :], xb_ref[0:1, :].astype(jnp.float32))
    y_b = jnp.where(r == nr - 1, y[TH - 2:TH - 1, :], yb_ref[0:1, :].astype(jnp.float32))

    # Edge masks, hoisted once (JAX does not CSE broadcasted iotas).
    col = lax.broadcasted_iota(jnp.int32, (TH, W), 1)
    row = lax.broadcasted_iota(jnp.int32, (TH, W), 0)
    col1 = lax.broadcasted_iota(jnp.int32, (1, W), 1)
    c_first, c_last = col == 0, col == W - 1
    c1_first, c1_last = col1 == 0, col1 == W - 1
    r_first, r_last = row == 0, row == TH - 1

    def h3(v, first, last):
        # 1x3 reflect sum along W (lanes): two XLU rotates + edge fix-ups.
        # (reflected neighbour of col 0 is col 1, of col W-1 is col W-2;
        #  the corrections are independent of the rotate direction convention)
        s = v + pltpu.roll(v, 1, 1) + pltpu.roll(v, W - 1, 1)
        s = s + jnp.where(first, v[:, 1:2] - v[:, W - 1:W], 0.0)
        s = s + jnp.where(last, v[:, W - 2:W - 1] - v[:, 0:1], 0.0)
        return s

    def pool3x3(a, a_top, a_bot):
        # Separable 3x3 / stride-1 average pool with reflect(1) boundaries.
        h = h3(a, c_first, c_last)             # (TH, W)
        h_top = h3(a_top, c1_first, c1_last)   # (1, W)  row above the tile
        h_bot = h3(a_bot, c1_first, c1_last)   # (1, W)  row below the tile
        s = h + pltpu.roll(h, 1, 0) + pltpu.roll(h, TH - 1, 0)
        s = s + jnp.where(r_first, h_top - h[TH - 1:TH, :], 0.0)
        s = s + jnp.where(r_last, h_bot - h[0:1, :], 0.0)
        return s * (1.0 / 9.0)

    mu_x = pool3x3(x, x_t, x_b)
    mu_y = pool3x3(y, y_t, y_b)
    mu_xx = pool3x3(x * x, x_t * x_t, x_b * x_b)
    mu_yy = pool3x3(y * y, y_t * y_t, y_b * y_b)
    mu_xy = pool3x3(x * y, x_t * y_t, x_b * y_b)

    mux2 = mu_x * mu_x
    muy2 = mu_y * mu_y
    muxy = mu_x * mu_y
    sigma_x = mu_xx - mux2
    sigma_y = mu_yy - muy2
    sigma_xy = mu_xy - muxy

    ssim_n = (2.0 * muxy + _C1) * (2.0 * sigma_xy + _C2)
    ssim_d = (mux2 + muy2 + _C1) * (sigma_x + sigma_y + _C2)
    out = (1.0 - ssim_n * pl.reciprocal(ssim_d, approx=True)) * 0.5
    o_ref[...] = jnp.clip(out, 0.0, 1.0).astype(o_ref.dtype)


def _pick_row_tile(h, w):
    """Largest multiple-of-8 divisor of h whose f32 row tile is ~<= 512 KiB."""
    if h < 8 or h % 8 != 0:
        return h                               # whole image, single row tile
    target = max(8, (512 * 1024) // (4 * w))
    best = 8
    for th in range(8, h + 1, 8):
        if h % th == 0 and th <= target:
            best = th
    return best


def ssim(x, y, *, row_tile=None):
    """SSIM loss map (forward of the PyTorch module).  x, y: (B, C, H, W)."""
    B, C, H, W = x.shape
    assert y.shape == x.shape
    assert H >= 2 and W >= 2, "ReflectionPad2d(1) needs H, W >= 2"
    NC = B * C

    TH = _pick_row_tile(H, W) if row_tile is None else row_tile
    assert TH == H or (TH % 8 == 0 and H % TH == 0), "bad row_tile"
    assert TH >= 2
    RT = H // TH
    HB = 8 if H >= 8 else H                    # halo block height (sublane ok)
    THB = TH // HB if TH % HB == 0 else 0      # row tile in halo-block units
    MAX_HBLK = H // HB - 1                     # last fully in-bounds halo block

    xr = x.reshape(NC, H, W)                   # free reshape: no transpose/pad
    yr = y.reshape(NC, H, W)

    main = pl.BlockSpec((None, TH, W), lambda c, r: (c, r, 0))
    top = pl.BlockSpec((None, HB, W),
                       lambda c, r: (c, jnp.maximum(r * THB - 1, 0), 0))
    bot = pl.BlockSpec((None, HB, W),
                       lambda c, r: (c, jnp.minimum((r + 1) * THB, MAX_HBLK), 0))
    out_spec = pl.BlockSpec((None, TH, W), lambda c, r: (c, r, 0))

    out = pl.pallas_call(
        functools.partial(_ssim_kernel, hb=HB),
        out_shape=jax.ShapeDtypeStruct((NC, H, W), x.dtype),
        grid_spec=pltpu.PrefetchScalarGridSpec(
            num_scalar_prefetch=0,
            grid=(NC, RT),
            in_specs=[main, top, bot, main, top, bot],
            out_specs=out_spec,
        ),
        compiler_params=pltpu.CompilerParams(
            dimension_semantics=("parallel", "parallel"),
            vmem_limit_bytes=32 * 1024 * 1024,
        ),
    )(xr, xr, xr, yr, yr, yr)

    return out.reshape(B, C, H, W)


def _ssim_ref(x, y):
    """Pure-JAX reference mirroring the PyTorch module."""
    def pool(a):
        h, w = a.shape[2] - 2, a.shape[3] - 2
        return sum(a[:, :, kh:kh + h, kw:kw + w]
                   for kh in range(3) for kw in range(3)) / 9.0

    xr = jnp.pad(x, ((0, 0), (0, 0), (1, 1), (1, 1)), mode="reflect")
    yr = jnp.pad(y, ((0, 0), (0, 0), (1, 1), (1, 1)), mode="reflect")
    mu_x, mu_y = pool(xr), pool(yr)
    sigma_x = pool(xr * xr) - mu_x ** 2
    sigma_y = pool(yr * yr) - mu_y ** 2
    sigma_xy = pool(xr * yr) - mu_x * mu_y
    n = (2 * mu_x * mu_y + _C1) * (2 * sigma_xy + _C2)
    d = (mu_x ** 2 + mu_y ** 2 + _C1) * (sigma_x + sigma_y + _C2)
    return jnp.clip((1 - n / d) / 2, 0.0, 1.0)


if __name__ == "__main__":
    key = jax.random.PRNGKey(0)
    kx, ky = jax.random.split(key)
    B, C, H, W = 2, 4, 16, 16
    x = jax.random.uniform(kx, (B, C, H, W), dtype=jnp.float32)
    y = jax.random.uniform(ky, (B, C, H, W), dtype=jnp.float32)

    ref = jax.block_until_ready(_ssim_ref(x, y))

    out = jax.block_until_ready(ssim(x, y))                  # auto row tiling
    out_rt = jax.block_until_ready(ssim(x, y, row_tile=8))   # exercises halos

    assert out.shape == (B, C, H, W), out.shape
    tol = 2e-3   # pl.reciprocal(approx=True) runs on the EUP
    assert float(jnp.max(jnp.abs(out - ref))) < tol
    assert float(jnp.max(jnp.abs(out_rt - ref))) < tol
    print("KERNEL_OK")
</pallas_src>

<mosaic_0001>
module attributes {stable_mosaic.version = 11 : i64} {
  func.func @_ssim_kernel(%arg0: i32, %arg1: i32, %arg2: memref<1x16x16xf32, #tpu.memory_space<vmem>>, %arg3: memref<1x8x16xf32, #tpu.memory_space<vmem>>, %arg4: memref<1x8x16xf32, #tpu.memory_space<vmem>>, %arg5: memref<1x16x16xf32, #tpu.memory_space<vmem>>, %arg6: memref<1x8x16xf32, #tpu.memory_space<vmem>>, %arg7: memref<1x8x16xf32, #tpu.memory_space<vmem>>, %arg8: memref<1x16x16xf32, #tpu.memory_space<vmem>>) attributes {dimension_semantics = [#tpu.dimension_semantics<parallel>, #tpu.dimension_semantics<parallel>], iteration_bounds = array<i64: 8, 1>, scalar_prefetch = 0 : i64, scratch_operands = 0 : i64, tpu.core_type = #tpu.core_type<tc>, window_params = [{transform_indices = @transform_0, window_bounds = array<i64: 1, 16, 16>}, {transform_indices = @transform_1, window_bounds = array<i64: 1, 8, 16>}, {transform_indices = @transform_2, window_bounds = array<i64: 1, 8, 16>}, {transform_indices = @transform_3, window_bounds = array<i64: 1, 16, 16>}, {transform_indices = @transform_4, window_bounds = array<i64: 1, 8, 16>}, {transform_indices = @transform_5, window_bounds = array<i64: 1, 8, 16>}, {transform_indices = @transform_6, window_bounds = array<i64: 1, 16, 16>}]} {
    %c0 = arith.constant 0 : index
    %c0_0 = arith.constant 0 : index
    %c0_1 = arith.constant 0 : index
    %0 = vector.load %arg2[%c0, %c0_0, %c0_1] : memref<1x16x16xf32, #tpu.memory_space<vmem>>, vector<1x16x16xf32>
    %1 = vector.shape_cast %0 : vector<1x16x16xf32> to vector<16x16xf32>
    %c0_2 = arith.constant 0 : index
    %c0_3 = arith.constant 0 : index
    %c0_4 = arith.constant 0 : index
    %2 = vector.load %arg5[%c0_2, %c0_3, %c0_4] : memref<1x16x16xf32, #tpu.memory_space<vmem>>, vector<1x16x16xf32>
    %3 = vector.shape_cast %2 : vector<1x16x16xf32> to vector<16x16xf32>
    %c0_i32 = arith.constant 0 : i32
    %4 = arith.cmpi eq, %arg1, %c0_i32 : i32
    %5 = vector.extract_strided_slice %1 {offsets = [1, 0], sizes = [1, 16], strides = [1, 1]} : vector<16x16xf32> to vector<1x16xf32>
    %c0_5 = arith.constant 0 : index
    %c7 = arith.constant 7 : index
    %c0_6 = arith.constant 0 : index
    %6 = vector.load %arg3[%c0_5, %c7, %c0_6] : memref<1x8x16xf32, #tpu.memory_space<vmem>>, vector<1x1x16xf32>
    %7 = vector.shape_cast %6 : vector<1x1x16xf32> to vector<1x16xf32>
    %8 = arith.select %4, %5, %7 : vector<1x16xf32>
    %c0_i32_7 = arith.constant 0 : i32
    %9 = arith.cmpi eq, %arg1, %c0_i32_7 : i32
    %10 = vector.extract_strided_slice %3 {offsets = [1, 0], sizes = [1, 16], strides = [1, 1]} : vector<16x16xf32> to vector<1x16xf32>
    %c0_8 = arith.constant 0 : index
    %c7_9 = arith.constant 7 : index
    %c0_10 = arith.constant 0 : index
    %11 = vector.load %arg6[%c0_8, %c7_9, %c0_10] : memref<1x8x16xf32, #tpu.memory_space<vmem>>, vector<1x1x16xf32>
    %12 = vector.shape_cast %11 : vector<1x1x16xf32> to vector<1x16xf32>
    %13 = arith.select %9, %10, %12 : vector<1x16xf32>
    %c0_i32_11 = arith.constant 0 : i32
    %14 = arith.cmpi eq, %arg1, %c0_i32_11 : i32
    %15 = vector.extract_strided_slice %1 {offsets = [14, 0], sizes = [1, 16], strides = [1, 1]} : vector<16x16xf32> to vector<1x16xf32>
    %c0_12 = arith.constant 0 : index
    %c0_13 = arith.constant 0 : index
    %c0_14 = arith.constant 0 : index
    %16 = vector.load %arg4[%c0_12, %c0_13, %c0_14] : memref<1x8x16xf32, #tpu.memory_space<vmem>>, vector<1x1x16xf32>
    %17 = vector.shape_cast %16 : vector<1x1x16xf32> to vector<1x16xf32>
    %18 = arith.select %14, %15, %17 : vector<1x16xf32>
    %c0_i32_15 = arith.constant 0 : i32
    %19 = arith.cmpi eq, %arg1, %c0_i32_15 : i32
    %20 = vector.extract_strided_slice %3 {offsets = [14, 0], sizes = [1, 16], strides = [1, 1]} : vector<16x16xf32> to vector<1x16xf32>
    %c0_16 = arith.constant 0 : index
    %c0_17 = arith.constant 0 : index
    %c0_18 = arith.constant 0 : index
    %21 = vector.load %arg7[%c0_16, %c0_17, %c0_18] : memref<1x8x16xf32, #tpu.memory_space<vmem>>, vector<1x1x16xf32>
    %22 = vector.shape_cast %21 : vector<1x1x16xf32> to vector<1x16xf32>
    %23 = arith.select %19, %20, %22 : vector<1x16xf32>
    %24 = tpu.iota {dimensions = array<i32: 1>} : vector<16x16xi32>
    %25 = tpu.iota {dimensions = array<i32: 0>} : vector<16x16xi32>
    %26 = tpu.iota {dimensions = array<i32: 1>} : vector<1x16xi32>
    %c0_i32_19 = arith.constant 0 : i32
    %27 = vector.broadcast %c0_i32_19 : i32 to vector<16x16xi32>
    %28 = arith.cmpi eq, %24, %27 : vector<16x16xi32>
    %c15_i32 = arith.constant 15 : i32
    %29 = vector.broadcast %c15_i32 : i32 to vector<16x16xi32>
    %30 = arith.cmpi eq, %24, %29 : vector<16x16xi32>
    %c0_i32_20 = arith.constant 0 : i32
    %31 = vector.broadcast %c0_i32_20 : i32 to vector<1x16xi32>
    %32 = arith.cmpi eq, %26, %31 : vector<1x16xi32>
    %c15_i32_21 = arith.constant 15 : i32
    %33 = vector.broadcast %c15_i32_21 : i32 to vector<1x16xi32>
    %34 = arith.cmpi eq, %26, %33 : vector<1x16xi32>
    %c0_i32_22 = arith.constant 0 : i32
    %35 = vector.broadcast %c0_i32_22 : i32 to vector<16x16xi32>
    %36 = arith.cmpi eq, %25, %35 : vector<16x16xi32>
    %c15_i32_23 = arith.constant 15 : i32
    %37 = vector.broadcast %c15_i32_23 : i32 to vector<16x16xi32>
    %38 = arith.cmpi eq, %25, %37 : vector<16x16xi32>
    %c1_i32 = arith.constant 1 : i32
    %39 = tpu.dynamic_rotate %1 by %c1_i32 dim 1 : vector<16x16xf32>, i32 -> vector<16x16xf32>
    %40 = arith.addf %1, %39 : vector<16x16xf32>
    %c15_i32_24 = arith.constant 15 : i32
    %41 = tpu.dynamic_rotate %1 by %c15_i32_24 dim 1 : vector<16x16xf32>, i32 -> vector<16x16xf32>
    %42 = arith.addf %40, %41 : vector<16x16xf32>
    %43 = vector.extract_strided_slice %1 {offsets = [0, 1], sizes = [16, 1], strides = [1, 1]} : vector<16x16xf32> to vector<16x1xf32>
    %44 = vector.extract_strided_slice %1 {offsets = [0, 15], sizes = [16, 1], strides = [1, 1]} : vector<16x16xf32> to vector<16x1xf32>
    %45 = arith.subf %43, %44 : vector<16x1xf32>
    %cst = arith.constant 0.000000e+00 : f32
    %46 = vector.shape_cast %45 : vector<16x1xf32> to vector<16x1xf32>
    %47 = vector.broadcast %46 : vector<16x1xf32> to vector<16x16xf32>
    %48 = vector.broadcast %cst : f32 to vector<16x16xf32>
    %49 = arith.select %28, %47, %48 : vector<16x16xi1>, vector<16x16xf32>
    %50 = arith.addf %42, %49 : vector<16x16xf32>
    %51 = vector.extract_strided_slice %1 {offsets = [0, 14], sizes = [16, 1], strides = [1, 1]} : vector<16x16xf32> to vector<16x1xf32>
    %52 = vector.extract_strided_slice %1 {offsets = [0, 0], sizes = [16, 1], strides = [1, 1]} : vector<16x16xf32> to vector<16x1xf32>
    %53 = arith.subf %51, %52 : vector<16x1xf32>
    %cst_25 = arith.constant 0.000000e+00 : f32
    %54 = vector.shape_cast %53 : vector<16x1xf32> to vector<16x1xf32>
    %55 = vector.broadcast %54 : vector<16x1xf32> to vector<16x16xf32>
    %56 = vector.broadcast %cst_25 : f32 to vector<16x16xf32>
    %57 = arith.select %30, %55, %56 : vector<16x16xi1>, vector<16x16xf32>
    %58 = arith.addf %50, %57 : vector<16x16xf32>
    %c1_i32_26 = arith.constant 1 : i32
    %59 = tpu.dynamic_rotate %8 by %c1_i32_26 dim 1 : vector<1x16xf32>, i32 -> vector<1x16xf32>
    %60 = arith.addf %8, %59 : vector<1x16xf32>
    %c15_i32_27 = arith.constant 15 : i32
    %61 = tpu.dynamic_rotate %8 by %c15_i32_27 dim 1 : vector<1x16xf32>, i32 -> vector<1x16xf32>
    %62 = arith.addf %60, %61 : vector<1x16xf32>
    %63 = vector.extract_strided_slice %8 {offsets = [0, 1], sizes = [1, 1], strides = [1, 1]} : vector<1x16xf32> to vector<1x1xf32>
    %64 = vector.extract_strided_slice %8 {offsets = [0, 15], sizes = [1, 1], strides = [1, 1]} : vector<1x16xf32> to vector<1x1xf32>
    %65 = arith.subf %63, %64 : vector<1x1xf32>
    %cst_28 = arith.constant 0.000000e+00 : f32
    %66 = vector.shape_cast %65 : vector<1x1xf32> to vector<1x1xf32>
    %67 = vector.broadcast %66 : vector<1x1xf32> to vector<1x16xf32>
    %68 = vector.broadcast %cst_28 : f32 to vector<1x16xf32>
    %69 = arith.select %32, %67, %68 : vector<1x16xi1>, vector<1x16xf32>
    %70 = arith.addf %62, %69 : vector<1x16xf32>
    %71 = vector.extract_strided_slice %8 {offsets = [0, 14], sizes = [1, 1], strides = [1, 1]} : vector<1x16xf32> to vector<1x1xf32>
    %72 = vector.extract_strided_slice %8 {offsets = [0, 0], sizes = [1, 1], strides = [1, 1]} : vector<1x16xf32> to vector<1x1xf32>
    %73 = arith.subf %71, %72 : vector<1x1xf32>
    %cst_29 = arith.constant 0.000000e+00 : f32
    %74 = vector.shape_cast %73 : vector<1x1xf32> to vector<1x1xf32>
    %75 = vector.broadcast %74 : vector<1x1xf32> to vector<1x16xf32>
    %76 = vector.broadcast %cst_29 : f32 to vector<1x16xf32>
    %77 = arith.select %34, %75, %76 : vector<1x16xi1>, vector<1x16xf32>
    %78 = arith.addf %70, %77 : vector<1x16xf32>
    %c1_i32_30 = arith.constant 1 : i32
    %79 = tpu.dynamic_rotate %18 by %c1_i32_30 dim 1 : vector<1x16xf32>, i32 -> vector<1x16xf32>
    %80 = arith.addf %18, %79 : vector<1x16xf32>
    %c15_i32_31 = arith.constant 15 : i32
    %81 = tpu.dynamic_rotate %18 by %c15_i32_31 dim 1 : vector<1x16xf32>, i32 -> vector<1x16xf32>
    %82 = arith.addf %80, %81 : vector<1x16xf32>
    %83 = vector.extract_strided_slice %18 {offsets = [0, 1], sizes = [1, 1], strides = [1, 1]} : vector<1x16xf32> to vector<1x1xf32>
    %84 = vector.extract_strided_slice %18 {offsets = [0, 15], sizes = [1, 1], strides = [1, 1]} : vector<1x16xf32> to vector<1x1xf32>
    %85 = arith.subf %83, %84 : vector<1x1xf32>
    %cst_32 = arith.constant 0.000000e+00 : f32
    %86 = vector.shape_cast %85 : vector<1x1xf32> to vector<1x1xf32>
    %87 = vector.broadcast %86 : vector<1x1xf32> to vector<1x16xf32>
    %88 = vector.broadcast %cst_32 : f32 to vector<1x16xf32>
    %89 = arith.select %32, %87, %88 : vector<1x16xi1>, vector<1x16xf32>
    %90 = arith.addf %82, %89 : vector<1x16xf32>
    %91 = vector.extract_strided_slice %18 {offsets = [0, 14], sizes = [1, 1], strides = [1, 1]} : vector<1x16xf32> to vector<1x1xf32>
    %92 = vector.extract_strided_slice %18 {offsets = [0, 0], sizes = [1, 1], strides = [1, 1]} : vector<1x16xf32> to vector<1x1xf32>
    %93 = arith.subf %91, %92 : vector<1x1xf32>
    %cst_33 = arith.constant 0.000000e+00 : f32
    %94 = vector.shape_cast %93 : vector<1x1xf32> to vector<1x1xf32>
    %95 = vector.broadcast %94 : vector<1x1xf32> to vector<1x16xf32>
    %96 = vector.broadcast %cst_33 : f32 to vector<1x16xf32>
    %97 = arith.select %34, %95, %96 : vector<1x16xi1>, vector<1x16xf32>
    %98 = arith.addf %90, %97 : vector<1x16xf32>
    %c1_i32_34 = arith.constant 1 : i32
    %99 = tpu.dynamic_rotate %58 by %c1_i32_34 dim 0 : vector<16x16xf32>, i32 -> vector<16x16xf32>
    %100 = arith.addf %58, %99 : vector<16x16xf32>
    %c15_i32_35 = arith.constant 15 : i32
    %101 = tpu.dynamic_rotate %58 by %c15_i32_35 dim 0 : vector<16x16xf32>, i32 -> vector<16x16xf32>
    %102 = arith.addf %100, %101 : vector<16x16xf32>
    %103 = vector.extract_strided_slice %58 {offsets = [15, 0], sizes = [1, 16], strides = [1, 1]} : vector<16x16xf32> to vector<1x16xf32>
    %104 = arith.subf %78, %103 : vector<1x16xf32>
    %cst_36 = arith.constant 0.000000e+00 : f32
    %105 = vector.shape_cast %104 : vector<1x16xf32> to vector<1x16xf32>
    %106 = vector.broadcast %105 : vector<1x16xf32> to vector<16x16xf32>
    %107 = vector.broadcast %cst_36 : f32 to vector<16x16xf32>
    %108 = arith.select %36, %106, %107 : vector<16x16xi1>, vector<16x16xf32>
    %109 = arith.addf %102, %108 : vector<16x16xf32>
    %110 = vector.extract_strided_slice %58 {offsets = [0, 0], sizes = [1, 16], strides = [1, 1]} : vector<16x16xf32> to vector<1x16xf32>
    %111 = arith.subf %98, %110 : vector<1x16xf32>
    %cst_37 = arith.constant 0.000000e+00 : f32
    %112 = vector.shape_cast %111 : vector<1x16xf32> to vector<1x16xf32>
    %113 = vector.broadcast %112 : vector<1x16xf32> to vector<16x16xf32>
    %114 = vector.broadcast %cst_37 : f32 to vector<16x16xf32>
    %115 = arith.select %38, %113, %114 : vector<16x16xi1>, vector<16x16xf32>
    %116 = arith.addf %109, %115 : vector<16x16xf32>
    %cst_38 = arith.constant 0.111111112 : f32
    %117 = vector.broadcast %cst_38 : f32 to vector<16x16xf32>
    %118 = arith.mulf %116, %117 : vector<16x16xf32>
    %c1_i32_39 = arith.constant 1 : i32
    %119 = tpu.dynamic_rotate %3 by %c1_i32_39 dim 1 : vector<16x16xf32>, i32 -> vector<16x16xf32>
    %120 = arith.addf %3, %119 : vector<16x16xf32>
    %c15_i32_40 = arith.constant 15 : i32
    %121 = tpu.dynamic_rotate %3 by %c15_i32_40 dim 1 : vector<16x16xf32>, i32 -> vector<16x16xf32>
    %122 = arith.addf %120, %121 : vector<16x16xf32>
    %123 = vector.extract_strided_slice %3 {offsets = [0, 1], sizes = [16, 1], strides = [1, 1]} : vector<16x16xf32> to vector<16x1xf32>
    %124 = vector.extract_strided_slice %3 {offsets = [0, 15], sizes = [16, 1], strides = [1, 1]} : vector<16x16xf32> to vector<16x1xf32>
    %125 = arith.subf %123, %124 : vector<16x1xf32>
    %cst_41 = arith.constant 0.000000e+00 : f32
    %126 = vector.shape_cast %125 : vector<16x1xf32> to vector<16x1xf32>
    %127 = vector.broadcast %126 : vector<16x1xf32> to vector<16x16xf32>
    %128 = vector.broadcast %cst_41 : f32 to vector<16x16xf32>
    %129 = arith.select %28, %127, %128 : vector<16x16xi1>, vector<16x16xf32>
    %130 = arith.addf %122, %129 : vector<16x16xf32>
    %131 = vector.extract_strided_slice %3 {offsets = [0, 14], sizes = [16, 1], strides = [1, 1]} : vector<16x16xf32> to vector<16x1xf32>
    %132 = vector.extract_strided_slice %3 {offsets = [0, 0], sizes = [16, 1], strides = [1, 1]} : vector<16x16xf32> to vector<16x1xf32>
    %133 = arith.subf %131, %132 : vector<16x1xf32>
    %cst_42 = arith.constant 0.000000e+00 : f32
    %134 = vector.shape_cast %133 : vector<16x1xf32> to vector<16x1xf32>
    %135 = vector.broadcast %134 : vector<16x1xf32> to vector<16x16xf32>
    %136 = vector.broadcast %cst_42 : f32 to vector<16x16xf32>
    %137 = arith.select %30, %135, %136 : vector<16x16xi1>, vector<16x16xf32>
    %138 = arith.addf %130, %137 : vector<16x16xf32>
    %c1_i32_43 = arith.constant 1 : i32
    %139 = tpu.dynamic_rotate %13 by %c1_i32_43 dim 1 : vector<1x16xf32>, i32 -> vector<1x16xf32>
    %140 = arith.addf %13, %139 : vector<1x16xf32>
    %c15_i32_44 = arith.constant 15 : i32
    %141 = tpu.dynamic_rotate %13 by %c15_i32_44 dim 1 : vector<1x16xf32>, i32 -> vector<1x16xf32>
    %142 = arith.addf %140, %141 : vector<1x16xf32>
    %143 = vector.extract_strided_slice %13 {offsets = [0, 1], sizes = [1, 1], strides = [1, 1]} : vector<1x16xf32> to vector<1x1xf32>
    %144 = vector.extract_strided_slice %13 {offsets = [0, 15], sizes = [1, 1], strides = [1, 1]} : vector<1x16xf32> to vector<1x1xf32>
    %145 = arith.subf %143, %144 : vector<1x1xf32>
    %cst_45 = arith.constant 0.000000e+00 : f32
    %146 = vector.shape_cast %145 : vector<1x1xf32> to vector<1x1xf32>
    %147 = vector.broadcast %146 : vector<1x1xf32> to vector<1x16xf32>
    %148 = vector.broadcast %cst_45 : f32 to vector<1x16xf32>
    %149 = arith.select %32, %147, %148 : vector<1x16xi1>, vector<1x16xf32>
    %150 = arith.addf %142, %149 : vector<1x16xf32>
    %151 = vector.extract_strided_slice %13 {offsets = [0, 14], sizes = [1, 1], strides = [1, 1]} : vector<1x16xf32> to vector<1x1xf32>
    %152 = vector.extract_strided_slice %13 {offsets = [0, 0], sizes = [1, 1], strides = [1, 1]} : vector<1x16xf32> to vector<1x1xf32>
    %153 = arith.subf %151, %152 : vector<1x1xf32>
    %cst_46 = arith.constant 0.000000e+00 : f32
    %154 = vector.shape_cast %153 : vector<1x1xf32> to vector<1x1xf32>
    %155 = vector.broadcast %154 : vector<1x1xf32> to vector<1x16xf32>
    %156 = vector.broadcast %cst_46 : f32 to vector<1x16xf32>
    %157 = arith.select %34, %155, %156 : vector<1x16xi1>, vector<1x16xf32>
    %158 = arith.addf %150, %157 : vector<1x16xf32>
    %c1_i32_47 = arith.constant 1 : i32
    %159 = tpu.dynamic_rotate %23 by %c1_i32_47 dim 1 : vector<1x16xf32>, i32 -> vector<1x16xf32>
    %160 = arith.addf %23, %159 : vector<1x16xf32>
    %c15_i32_48 = arith.constant 15 : i32
    %161 = tpu.dynamic_rotate %23 by %c15_i32_48 dim 1 : vector<1x16xf32>, i32 -> vector<1x16xf32>
    %162 = arith.addf %160, %161 : vector<1x16xf32>
    %163 = vector.extract_strided_slice %23 {offsets = [0, 1], sizes = [1, 1], strides = [1, 1]} : vector<1x16xf32> to vector<1x1xf32>
    %164 = vector.extract_strided_slice %23 {offsets = [0, 15], sizes = [1, 1], strides = [1, 1]} : vector<1x16xf32> to vector<1x1xf32>
    %165 = arith.subf %163, %164 : vector<1x1xf32>
    %cst_49 = arith.constant 0.000000e+00 : f32
    %166 = vector.shape_cast %165 : vector<1x1xf32> to vector<1x1xf32>
    %167 = vector.broadcast %166 : vector<1x1xf32> to vector<1x16xf32>
    %168 = vector.broadcast %cst_49 : f32 to vector<1x16xf32>
    %169 = arith.select %32, %167, %168 : vector<1x16xi1>, vector<1x16xf32>
    %170 = arith.addf %162, %169 : vector<1x16xf32>
    %171 = vector.extract_strided_slice %23 {offsets = [0, 14], sizes = [1, 1], strides = [1, 1]} : vector<1x16xf32> to vector<1x1xf32>
    %172 = vector.extract_strided_slice %23 {offsets = [0, 0], sizes = [1, 1], strides = [1, 1]} : vector<1x16xf32> to vector<1x1xf32>
    %173 = arith.subf %171, %172 : vector<1x1xf32>
    %cst_50 = arith.constant 0.000000e+00 : f32
    %174 = vector.shape_cast %173 : vector<1x1xf32> to vector<1x1xf32>
    %175 = vector.broadcast %174 : vector<1x1xf32> to vector<1x16xf32>
    %176 = vector.broadcast %cst_50 : f32 to vector<1x16xf32>
    %177 = arith.select %34, %175, %176 : vector<1x16xi1>, vector<1x16xf32>
    %178 = arith.addf %170, %177 : vector<1x16xf32>
    %c1_i32_51 = arith.constant 1 : i32
    %179 = tpu.dynamic_rotate %138 by %c1_i32_51 dim 0 : vector<16x16xf32>, i32 -> vector<16x16xf32>
    %180 = arith.addf %138, %179 : vector<16x16xf32>
    %c15_i32_52 = arith.constant 15 : i32
    %181 = tpu.dynamic_rotate %138 by %c15_i32_52 dim 0 : vector<16x16xf32>, i32 -> vector<16x16xf32>
    %182 = arith.addf %180, %181 : vector<16x16xf32>
    %183 = vector.extract_strided_slice %138 {offsets = [15, 0], sizes = [1, 16], strides = [1, 1]} : vector<16x16xf32> to vector<1x16xf32>
    %184 = arith.subf %158, %183 : vector<1x16xf32>
    %cst_53 = arith.constant 0.000000e+00 : f32
    %185 = vector.shape_cast %184 : vector<1x16xf32> to vector<1x16xf32>
    %186 = vector.broadcast %185 : vector<1x16xf32> to vector<16x16xf32>
    %187 = vector.broadcast %cst_53 : f32 to vector<16x16xf32>
    %188 = arith.select %36, %186, %187 : vector<16x16xi1>, vector<16x16xf32>
    %189 = arith.addf %182, %188 : vector<16x16xf32>
    %190 = vector.extract_strided_slice %138 {offsets = [0, 0], sizes = [1, 16], strides = [1, 1]} : vector<16x16xf32> to vector<1x16xf32>
    %191 = arith.subf %178, %190 : vector<1x16xf32>
    %cst_54 = arith.constant 0.000000e+00 : f32
    %192 = vector.shape_cast %191 : vector<1x16xf32> to vector<1x16xf32>
    %193 = vector.broadcast %192 : vector<1x16xf32> to vector<16x16xf32>
    %194 = vector.broadcast %cst_54 : f32 to vector<16x16xf32>
    %195 = arith.select %38, %193, %194 : vector<16x16xi1>, vector<16x16xf32>
    %196 = arith.addf %189, %195 : vector<16x16xf32>
    %cst_55 = arith.constant 0.111111112 : f32
    %197 = vector.broadcast %cst_55 : f32 to vector<16x16xf32>
    %198 = arith.mulf %196, %197 : vector<16x16xf32>
    %199 = arith.mulf %1, %1 : vector<16x16xf32>
    %200 = arith.mulf %8, %8 : vector<1x16xf32>
    %201 = arith.mulf %18, %18 : vector<1x16xf32>
    %c1_i32_56 = arith.constant 1 : i32
    %202 = tpu.dynamic_rotate %199 by %c1_i32_56 dim 1 : vector<16x16xf32>, i32 -> vector<16x16xf32>
    %203 = arith.addf %199, %202 : vector<16x16xf32>
    %c15_i32_57 = arith.constant 15 : i32
    %204 = tpu.dynamic_rotate %199 by %c15_i32_57 dim 1 : vector<16x16xf32>, i32 -> vector<16x16xf32>
    %205 = arith.addf %203, %204 : vector<16x16xf32>
    %206 = vector.extract_strided_slice %199 {offsets = [0, 1], sizes = [16, 1], strides = [1, 1]} : vector<16x16xf32> to vector<16x1xf32>
    %207 = vector.extract_strided_slice %199 {offsets = [0, 15], sizes = [16, 1], strides = [1, 1]} : vector<16x16xf32> to vector<16x1xf32>
    %208 = arith.subf %206, %207 : vector<16x1xf32>
    %cst_58 = arith.constant 0.000000e+00 : f32
    %209 = vector.shape_cast %208 : vector<16x1xf32> to vector<16x1xf32>
    %210 = vector.broadcast %209 : vector<16x1xf32> to vector<16x16xf32>
    %211 = vector.broadcast %cst_58 : f32 to vector<16x16xf32>
    %212 = arith.select %28, %210, %211 : vector<16x16xi1>, vector<16x16xf32>
    %213 = arith.addf %205, %212 : vector<16x16xf32>
    %214 = vector.extract_strided_slice %199 {offsets = [0, 14], sizes = [16, 1], strides = [1, 1]} : vector<16x16xf32> to vector<16x1xf32>
    %215 = vector.extract_strided_slice %199 {offsets = [0, 0], sizes = [16, 1], strides = [1, 1]} : vector<16x16xf32> to vector<16x1xf32>
    %216 = arith.subf %214, %215 : vector<16x1xf32>
    %cst_59 = arith.constant 0.000000e+00 : f32
    %217 = vector.shape_cast %216 : vector<16x1xf32> to vector<16x1xf32>
    %218 = vector.broadcast %217 : vector<16x1xf32> to vector<16x16xf32>
    %219 = vector.broadcast %cst_59 : f32 to vector<16x16xf32>
    %220 = arith.select %30, %218, %219 : vector<16x16xi1>, vector<16x16xf32>
    %221 = arith.addf %213, %220 : vector<16x16xf32>
    %c1_i32_60 = arith.constant 1 : i32
    %222 = tpu.dynamic_rotate %200 by %c1_i32_60 dim 1 : vector<1x16xf32>, i32 -> vector<1x16xf32>
    %223 = arith.addf %200, %222 : vector<1x16xf32>
    %c15_i32_61 = arith.constant 15 : i32
    %224 = tpu.dynamic_rotate %200 by %c15_i32_61 dim 1 : vector<1x16xf32>, i32 -> vector<1x16xf32>
    %225 = arith.addf %223, %224 : vector<1x16xf32>
    %226 = vector.extract_strided_slice %200 {offsets = [0, 1], sizes = [1, 1], strides = [1, 1]} : vector<1x16xf32> to vector<1x1xf32>
    %227 = vector.extract_strided_slice %200 {offsets = [0, 15], sizes = [1, 1], strides = [1, 1]} : vector<1x16xf32> to vector<1x1xf32>
    %228 = arith.subf %226, %227 : vector<1x1xf32>
    %cst_62 = arith.constant 0.000000e+00 : f32
    %229 = vector.shape_cast %228 : vector<1x1xf32> to vector<1x1xf32>
    %230 = vector.broadcast %229 : vector<1x1xf32> to vector<1x16xf32>
    %231 = vector.broadcast %cst_62 : f32 to vector<1x16xf32>
    %232 = arith.select %32, %230, %231 : vector<1x16xi1>, vector<1x16xf32>
    %233 = arith.addf %225, %232 : vector<1x16xf32>
    %234 = vector.extract_strided_slice %200 {offsets = [0, 14], sizes = [1, 1], strides = [1, 1]} : vector<1x16xf32> to vector<1x1xf32>
    %235 = vector.extract_strided_slice %200 {offsets = [0, 0], sizes = [1, 1], strides = [1, 1]} : vector<1x16xf32> to vector<1x1xf32>
    %236 = arith.subf %234, %235 : vector<1x1xf32>
    %cst_63 = arith.constant 0.000000e+00 : f32
    %237 = vector.shape_cast %236 : vector<1x1xf32> to vector<1x1xf32>
    %238 = vector.broadcast %237 : vector<1x1xf32> to vector<1x16xf32>
    %239 = vector.broadcast %cst_63 : f32 to vector<1x16xf32>
    %240 = arith.select %34, %238, %239 : vector<1x16xi1>, vector<1x16xf32>
    %241 = arith.addf %233, %240 : vector<1x16xf32>
    %c1_i32_64 = arith.constant 1 : i32
    %242 = tpu.dynamic_rotate %201 by %c1_i32_64 dim 1 : vector<1x16xf32>, i32 -> vector<1x16xf32>
    %243 = arith.addf %201, %242 : vector<1x16xf32>
    %c15_i32_65 = arith.constant 15 : i32
    %244 = tpu.dynamic_rotate %201 by %c15_i32_65 dim 1 : vector<1x16xf32>, i32 -> vector<1x16xf32>
    %245 = arith.addf %243, %244 : vector<1x16xf32>
    %246 = vector.extract_strided_slice %201 {offsets = [0, 1], sizes = [1, 1], strides = [1, 1]} : vector<1x16xf32> to vector<1x1xf32>
    %247 = vector.extract_strided_slice %201 {offsets = [0, 15], sizes = [1, 1], strides = [1, 1]} : vector<1x16xf32> to vector<1x1xf32>
    %248 = arith.subf %246, %247 : vector<1x1xf32>
    %cst_66 = arith.constant 0.000000e+00 : f32
    %249 = vector.shape_cast %248 : vector<1x1xf32> to vector<1x1xf32>
    %250 = vector.broadcast %249 : vector<1x1xf32> to vector<1x16xf32>
    %251 = vector.broadcast %cst_66 : f32 to vector<1x16xf32>
    %252 = arith.select %32, %250, %251 : vector<1x16xi1>, vector<1x16xf32>
    %253 = arith.addf %245, %252 : vector<1x16xf32>
    %254 = vector.extract_strided_slice %201 {offsets = [0, 14], sizes = [1, 1], strides = [1, 1]} : vector<1x16xf32> to vector<1x1xf32>
    %255 = vector.extract_strided_slice %201 {offsets = [0, 0], sizes = [1, 1], strides = [1, 1]} : vector<1x16xf32> to vector<1x1xf32>
    %256 = arith.subf %254, %255 : vector<1x1xf32>
    %cst_67 = arith.constant 0.000000e+00 : f32
    %257 = vector.shape_cast %256 : vector<1x1xf32> to vector<1x1xf32>
    %258 = vector.broadcast %257 : vector<1x1xf32> to vector<1x16xf32>
    %259 = vector.broadcast %cst_67 : f32 to vector<1x16xf32>
    %260 = arith.select %34, %258, %259 : vector<1x16xi1>, vector<1x16xf32>
    %261 = arith.addf %253, %260 : vector<1x16xf32>
    %c1_i32_68 = arith.constant 1 : i32
    %262 = tpu.dynamic_rotate %221 by %c1_i32_68 dim 0 : vector<16x16xf32>, i32 -> vector<16x16xf32>
    %263 = arith.addf %221, %262 : vector<16x16xf32>
    %c15_i32_69 = arith.constant 15 : i32
    %264 = tpu.dynamic_rotate %221 by %c15_i32_69 dim 0 : vector<16x16xf32>, i32 -> vector<16x16xf32>
    %265 = arith.addf %263, %264 : vector<16x16xf32>
    %266 = vector.extract_strided_slice %221 {offsets = [15, 0], sizes = [1, 16], strides = [1, 1]} : vector<16x16xf32> to vector<1x16xf32>
    %267 = arith.subf %241, %266 : vector<1x16xf32>
    %cst_70 = arith.constant 0.000000e+00 : f32
    %268 = vector.shape_cast %267 : vector<1x16xf32> to vector<1x16xf32>
    %269 = vector.broadcast %268 : vector<1x16xf32> to vector<16x16xf32>
    %270 = vector.broadcast %cst_70 : f32 to vector<16x16xf32>
    %271 = arith.select %36, %269, %270 : vector<16x16xi1>, vector<16x16xf32>
    %272 = arith.addf %265, %271 : vector<16x16xf32>
    %273 = vector.extract_strided_slice %221 {offsets = [0, 0], sizes = [1, 16], strides = [1, 1]} : vector<16x16xf32> to vector<1x16xf32>
    %274 = arith.subf %261, %273 : vector<1x16xf32>
    %cst_71 = arith.constant 0.000000e+00 : f32
    %275 = vector.shape_cast %274 : vector<1x16xf32> to vector<1x16xf32>
    %276 = vector.broadcast %275 : vector<1x16xf32> to vector<16x16xf32>
    %277 = vector.broadcast %cst_71 : f32 to vector<16x16xf32>
    %278 = arith.select %38, %276, %277 : vector<16x16xi1>, vector<16x16xf32>
    %279 = arith.addf %272, %278 : vector<16x16xf32>
    %cst_72 = arith.constant 0.111111112 : f32
    %280 = vector.broadcast %cst_72 : f32 to vector<16x16xf32>
    %281 = arith.mulf %279, %280 : vector<16x16xf32>
    %282 = arith.mulf %3, %3 : vector<16x16xf32>
    %283 = arith.mulf %13, %13 : vector<1x16xf32>
    %284 = arith.mulf %23, %23 : vector<1x16xf32>
    %c1_i32_73 = arith.constant 1 : i32
    %285 = tpu.dynamic_rotate %282 by %c1_i32_73 dim 1 : vector<16x16xf32>, i32 -> vector<16x16xf32>
    %286 = arith.addf %282, %285 : vector<16x16xf32>
    %c15_i32_74 = arith.constant 15 : i32
    %287 = tpu.dynamic_rotate %282 by %c15_i32_74 dim 1 : vector<16x16xf32>, i32 -> vector<16x16xf32>
    %288 = arith.addf %286, %287 : vector<16x16xf32>
    %289 = vector.extract_strided_slice %282 {offsets = [0, 1], sizes = [16, 1], strides = [1, 1]} : vector<16x16xf32> to vector<16x1xf32>
    %290 = vector.extract_strided_slice %282 {offsets = [0, 15], sizes = [16, 1], strides = [1, 1]} : vector<16x16xf32> to vector<16x1xf32>
    %291 = arith.subf %289, %290 : vector<16x1xf32>
    %cst_75 = arith.constant 0.000000e+00 : f32
    %292 = vector.shape_cast %291 : vector<16x1xf32> to vector<16x1xf32>
    %293 = vector.broadcast %292 : vector<16x1xf32> to vector<16x16xf32>
    %294 = vector.broadcast %cst_75 : f32 to vector<16x16xf32>
    %295 = arith.select %28, %293, %294 : vector<16x16xi1>, vector<16x16xf32>
    %296 = arith.addf %288, %295 : vector<16x16xf32>
    %297 = vector.extract_strided_slice %282 {offsets = [0, 14], sizes = [16, 1], strides = [1, 1]} : vector<16x16xf32> to vector<16x1xf32>
    %298 = vector.extract_strided_slice %282 {offsets = [0, 0], sizes = [16, 1], strides = [1, 1]} : vector<16x16xf32> to vector<16x1xf32>
    %299 = arith.subf %297, %298 : vector<16x1xf32>
    %cst_76 = arith.constant 0.000000e+00 : f32
    %300 = vector.shape_cast %299 : vector<16x1xf32> to vector<16x1xf32>
    %301 = vector.broadcast %300 : vector<16x1xf32> to vector<16x16xf32>
    %302 = vector.broadcast %cst_76 : f32 to vector<16x16xf32>
    %303 = arith.select %30, %301, %302 : vector<16x16xi1>, vector<16x16xf32>
    %304 = arith.addf %296, %303 : vector<16x16xf32>
    %c1_i32_77 = arith.constant 1 : i32
    %305 = tpu.dynamic_rotate %283 by %c1_i32_77 dim 1 : vector<1x16xf32>, i32 -> vector<1x16xf32>
    %306 = arith.addf %283, %305 : vector<1x16xf32>
    %c15_i32_78 = arith.constant 15 : i32
    %307 = tpu.dynamic_rotate %283 by %c15_i32_78 dim 1 : vector<1x16xf32>, i32 -> vector<1x16xf32>
    %308 = arith.addf %306, %307 : vector<1x16xf32>
    %309 = vector.extract_strided_slice %283 {offsets = [0, 1], sizes = [1, 1], strides = [1, 1]} : vector<1x16xf32> to vector<1x1xf32>
    %310 = vector.extract_strided_slice %283 {offsets = [0, 15], sizes = [1, 1], strides = [1, 1]} : vector<1x16xf32> to vector<1x1xf32>
    %311 = arith.subf %309, %310 : vector<1x1xf32>
    %cst_79 = arith.constant 0.000000e+00 : f32
    %312 = vector.shape_cast %311 : vector<1x1xf32> to vector<1x1xf32>
    %313 = vector.broadcast %312 : vector<1x1xf32> to vector<1x16xf32>
    %314 = vector.broadcast %cst_79 : f32 to vector<1x16xf32>
    %315 = arith.select %32, %313, %314 : vector<1x16xi1>, vector<1x16xf32>
    %316 = arith.addf %308, %315 : vector<1x16xf32>
    %317 = vector.extract_strided_slice %283 {offsets = [0, 14], sizes = [1, 1], strides = [1, 1]} : vector<1x16xf32> to vector<1x1xf32>
    %318 = vector.extract_strided_slice %283 {offsets = [0, 0], sizes = [1, 1], strides = [1, 1]} : vector<1x16xf32> to vector<1x1xf32>
    %319 = arith.subf %317, %318 : vector<1x1xf32>
    %cst_80 = arith.constant 0.000000e+00 : f32
    %320 = vector.shape_cast %319 : vector<1x1xf32> to vector<1x1xf32>
    %321 = vector.broadcast %320 : vector<1x1xf32> to vector<1x16xf32>
    %322 = vector.broadcast %cst_80 : f32 to vector<1x16xf32>
    %323 = arith.select %34, %321, %322 : vector<1x16xi1>, vector<1x16xf32>
    %324 = arith.addf %316, %323 : vector<1x16xf32>
    %c1_i32_81 = arith.constant 1 : i32
    %325 = tpu.dynamic_rotate %284 by %c1_i32_81 dim 1 : vector<1x16xf32>, i32 -> vector<1x16xf32>
    %326 = arith.addf %284, %325 : vector<1x16xf32>
    %c15_i32_82 = arith.constant 15 : i32
    %327 = tpu.dynamic_rotate %284 by %c15_i32_82 dim 1 : vector<1x16xf32>, i32 -> vector<1x16xf32>
    %328 = arith.addf %326, %327 : vector<1x16xf32>
    %329 = vector.extract_strided_slice %284 {offsets = [0, 1], sizes = [1, 1], strides = [1, 1]} : vector<1x16xf32> to vector<1x1xf32>
    %330 = vector.extract_strided_slice %284 {offsets = [0, 15], sizes = [1, 1], strides = [1, 1]} : vector<1x16xf32> to vector<1x1xf32>
    %331 = arith.subf %329, %330 : vector<1x1xf32>
    %cst_83 = arith.constant 0.000000e+00 : f32
    %332 = vector.shape_cast %331 : vector<1x1xf32> to vector<1x1xf32>
    %333 = vector.broadcast %332 : vector<1x1xf32> to vector<1x16xf32>
    %334 = vector.broadcast %cst_83 : f32 to vector<1x16xf32>
    %335 = arith.select %32, %333, %334 : vector<1x16xi1>, vector<1x16xf32>
    %336 = arith.addf %328, %335 : vector<1x16xf32>
    %337 = vector.extract_strided_slice %284 {offsets = [0, 14], sizes = [1, 1], strides = [1, 1]} : vector<1x16xf32> to vector<1x1xf32>
    %338 = vector.extract_strided_slice %284 {offsets = [0, 0], sizes = [1, 1], strides = [1, 1]} : vector<1x16xf32> to vector<1x1xf32>
    %339 = arith.subf %337, %338 : vector<1x1xf32>
    %cst_84 = arith.constant 0.000000e+00 : f32
    %340 = vector.shape_cast %339 : vector<1x1xf32> to vector<1x1xf32>
    %341 = vector.broadcast %340 : vector<1x1xf32> to vector<1x16xf32>
    %342 = vector.broadcast %cst_84 : f32 to vector<1x16xf32>
    %343 = arith.select %34, %341, %342 : vector<1x16xi1>, vector<1x16xf32>
    %344 = arith.addf %336, %343 : vector<1x16xf32>
    %c1_i32_85 = arith.constant 1 : i32
    %345 = tpu.dynamic_rotate %304 by %c1_i32_85 dim 0 : vector<16x16xf32>, i32 -> vector<16x16xf32>
    %346 = arith.addf %304, %345 : vector<16x16xf32>
    %c15_i32_86 = arith.constant 15 : i32
    %347 = tpu.dynamic_rotate %304 by %c15_i32_86 dim 0 : vector<16x16xf32>, i32 -> vector<16x16xf32>
    %348 = arith.addf %346, %347 : vector<16x16xf32>
    %349 = vector.extract_strided_slice %304 {offsets = [15, 0], sizes = [1, 16], strides = [1, 1]} : vector<16x16xf32> to vector<1x16xf32>
    %350 = arith.subf %324, %349 : vector<1x16xf32>
    %cst_87 = arith.constant 0.000000e+00 : f32
    %351 = vector.shape_cast %350 : vector<1x16xf32> to vector<1x16xf32>
    %352 = vector.broadcast %351 : vector<1x16xf32> to vector<16x16xf32>
    %353 = vector.broadcast %cst_87 : f32 to vector<16x16xf32>
    %354 = arith.select %36, %352, %353 : vector<16x16xi1>, vector<16x16xf32>
    %355 = arith.addf %348, %354 : vector<16x16xf32>
    %356 = vector.extract_strided_slice %304 {offsets = [0, 0], sizes = [1, 16], strides = [1, 1]} : vector<16x16xf32> to vector<1x16xf32>
    %357 = arith.subf %344, %356 : vector<1x16xf32>
    %cst_88 = arith.constant 0.000000e+00 : f32
    %358 = vector.shape_cast %357 : vector<1x16xf32> to vector<1x16xf32>
    %359 = vector.broadcast %358 : vector<1x16xf32> to vector<16x16xf32>
    %360 = vector.broadcast %cst_88 : f32 to vector<16x16xf32>
    %361 = arith.select %38, %359, %360 : vector<16x16xi1>, vector<16x16xf32>
    %362 = arith.addf %355, %361 : vector<16x16xf32>
    %cst_89 = arith.constant 0.111111112 : f32
    %363 = vector.broadcast %cst_89 : f32 to vector<16x16xf32>
    %364 = arith.mulf %362, %363 : vector<16x16xf32>
    %365 = arith.mulf %1, %3 : vector<16x16xf32>
    %366 = arith.mulf %8, %13 : vector<1x16xf32>
    %367 = arith.mulf %18, %23 : vector<1x16xf32>
    %c1_i32_90 = arith.constant 1 : i32
    %368 = tpu.dynamic_rotate %365 by %c1_i32_90 dim 1 : vector<16x16xf32>, i32 -> vector<16x16xf32>
    %369 = arith.addf %365, %368 : vector<16x16xf32>
    %c15_i32_91 = arith.constant 15 : i32
    %370 = tpu.dynamic_rotate %365 by %c15_i32_91 dim 1 : vector<16x16xf32>, i32 -> vector<16x16xf32>
    %371 = arith.addf %369, %370 : vector<16x16xf32>
    %372 = vector.extract_strided_slice %365 {offsets = [0, 1], sizes = [16, 1], strides = [1, 1]} : vector<16x16xf32> to vector<16x1xf32>
    %373 = vector.extract_strided_slice %365 {offsets = [0, 15], sizes = [16, 1], strides = [1, 1]} : vector<16x16xf32> to vector<16x1xf32>
    %374 = arith.subf %372, %373 : vector<16x1xf32>
    %cst_92 = arith.constant 0.000000e+00 : f32
    %375 = vector.shape_cast %374 : vector<16x1xf32> to vector<16x1xf32>
    %376 = vector.broadcast %375 : vector<16x1xf32> to vector<16x16xf32>
    %377 = vector.broadcast %cst_92 : f32 to vector<16x16xf32>
    %378 = arith.select %28, %376, %377 : vector<16x16xi1>, vector<16x16xf32>
    %379 = arith.addf %371, %378 : vector<16x16xf32>
    %380 = vector.extract_strided_slice %365 {offsets = [0, 14], sizes = [16, 1], strides = [1, 1]} : vector<16x16xf32> to vector<16x1xf32>
    %381 = vector.extract_strided_slice %365 {offsets = [0, 0], sizes = [16, 1], strides = [1, 1]} : vector<16x16xf32> to vector<16x1xf32>
    %382 = arith.subf %380, %381 : vector<16x1xf32>
    %cst_93 = arith.constant 0.000000e+00 : f32
    %383 = vector.shape_cast %382 : vector<16x1xf32> to vector<16x1xf32>
    %384 = vector.broadcast %383 : vector<16x1xf32> to vector<16x16xf32>
    %385 = vector.broadcast %cst_93 : f32 to vector<16x16xf32>
    %386 = arith.select %30, %384, %385 : vector<16x16xi1>, vector<16x16xf32>
    %387 = arith.addf %379, %386 : vector<16x16xf32>
    %c1_i32_94 = arith.constant 1 : i32
    %388 = tpu.dynamic_rotate %366 by %c1_i32_94 dim 1 : vector<1x16xf32>, i32 -> vector<1x16xf32>
    %389 = arith.addf %366, %388 : vector<1x16xf32>
    %c15_i32_95 = arith.constant 15 : i32
    %390 = tpu.dynamic_rotate %366 by %c15_i32_95 dim 1 : vector<1x16xf32>, i32 -> vector<1x16xf32>
    %391 = arith.addf %389, %390 : vector<1x16xf32>
    %392 = vector.extract_strided_slice %366 {offsets = [0, 1], sizes = [1, 1], strides = [1, 1]} : vector<1x16xf32> to vector<1x1xf32>
    %393 = vector.extract_strided_slice %366 {offsets = [0, 15], sizes = [1, 1], strides = [1, 1]} : vector<1x16xf32> to vector<1x1xf32>
    %394 = arith.subf %392, %393 : vector<1x1xf32>
    %cst_96 = arith.constant 0.000000e+00 : f32
    %395 = vector.shape_cast %394 : vector<1x1xf32> to vector<1x1xf32>
    %396 = vector.broadcast %395 : vector<1x1xf32> to vector<1x16xf32>
    %397 = vector.broadcast %cst_96 : f32 to vector<1x16xf32>
    %398 = arith.select %32, %396, %397 : vector<1x16xi1>, vector<1x16xf32>
    %399 = arith.addf %391, %398 : vector<1x16xf32>
    %400 = vector.extract_strided_slice %366 {offsets = [0, 14], sizes = [1, 1], strides = [1, 1]} : vector<1x16xf32> to vector<1x1xf32>
    %401 = vector.extract_strided_slice %366 {offsets = [0, 0], sizes = [1, 1], strides = [1, 1]} : vector<1x16xf32> to vector<1x1xf32>
    %402 = arith.subf %400, %401 : vector<1x1xf32>
    %cst_97 = arith.constant 0.000000e+00 : f32
    %403 = vector.shape_cast %402 : vector<1x1xf32> to vector<1x1xf32>
    %404 = vector.broadcast %403 : vector<1x1xf32> to vector<1x16xf32>
    %405 = vector.broadcast %cst_97 : f32 to vector<1x16xf32>
    %406 = arith.select %34, %404, %405 : vector<1x16xi1>, vector<1x16xf32>
    %407 = arith.addf %399, %406 : vector<1x16xf32>
    %c1_i32_98 = arith.constant 1 : i32
    %408 = tpu.dynamic_rotate %367 by %c1_i32_98 dim 1 : vector<1x16xf32>, i32 -> vector<1x16xf32>
    %409 = arith.addf %367, %408 : vector<1x16xf32>
    %c15_i32_99 = arith.constant 15 : i32
    %410 = tpu.dynamic_rotate %367 by %c15_i32_99 dim 1 : vector<1x16xf32>, i32 -> vector<1x16xf32>
    %411 = arith.addf %409, %410 : vector<1x16xf32>
    %412 = vector.extract_strided_slice %367 {offsets = [0, 1], sizes = [1, 1], strides = [1, 1]} : vector<1x16xf32> to vector<1x1xf32>
    %413 = vector.extract_strided_slice %367 {offsets = [0, 15], sizes = [1, 1], strides = [1, 1]} : vector<1x16xf32> to vector<1x1xf32>
    %414 = arith.subf %412, %413 : vector<1x1xf32>
    %cst_100 = arith.constant 0.000000e+00 : f32
    %415 = vector.shape_cast %414 : vector<1x1xf32> to vector<1x1xf32>
    %416 = vector.broadcast %415 : vector<1x1xf32> to vector<1x16xf32>
    %417 = vector.broadcast %cst_100 : f32 to vector<1x16xf32>
    %418 = arith.select %32, %416, %417 : vector<1x16xi1>, vector<1x16xf32>
    %419 = arith.addf %411, %418 : vector<1x16xf32>
    %420 = vector.extract_strided_slice %367 {offsets = [0, 14], sizes = [1, 1], strides = [1, 1]} : vector<1x16xf32> to vector<1x1xf32>
    %421 = vector.extract_strided_slice %367 {offsets = [0, 0], sizes = [1, 1], strides = [1, 1]} : vector<1x16xf32> to vector<1x1xf32>
    %422 = arith.subf %420, %421 : vector<1x1xf32>
    %cst_101 = arith.constant 0.000000e+00 : f32
    %423 = vector.shape_cast %422 : vector<1x1xf32> to vector<1x1xf32>
    %424 = vector.broadcast %423 : vector<1x1xf32> to vector<1x16xf32>
    %425 = vector.broadcast %cst_101 : f32 to vector<1x16xf32>
    %426 = arith.select %34, %424, %425 : vector<1x16xi1>, vector<1x16xf32>
    %427 = arith.addf %419, %426 : vector<1x16xf32>
    %c1_i32_102 = arith.constant 1 : i32
    %428 = tpu.dynamic_rotate %387 by %c1_i32_102 dim 0 : vector<16x16xf32>, i32 -> vector<16x16xf32>
    %429 = arith.addf %387, %428 : vector<16x16xf32>
    %c15_i32_103 = arith.constant 15 : i32
    %430 = tpu.dynamic_rotate %387 by %c15_i32_103 dim 0 : vector<16x16xf32>, i32 -> vector<16x16xf32>
    %431 = arith.addf %429, %430 : vector<16x16xf32>
    %432 = vector.extract_strided_slice %387 {offsets = [15, 0], sizes = [1, 16], strides = [1, 1]} : vector<16x16xf32> to vector<1x16xf32>
    %433 = arith.subf %407, %432 : vector<1x16xf32>
    %cst_104 = arith.constant 0.000000e+00 : f32
    %434 = vector.shape_cast %433 : vector<1x16xf32> to vector<1x16xf32>
    %435 = vector.broadcast %434 : vector<1x16xf32> to vector<16x16xf32>
    %436 = vector.broadcast %cst_104 : f32 to vector<16x16xf32>
    %437 = arith.select %36, %435, %436 : vector<16x16xi1>, vector<16x16xf32>
    %438 = arith.addf %431, %437 : vector<16x16xf32>
    %439 = vector.extract_strided_slice %387 {offsets = [0, 0], sizes = [1, 16], strides = [1, 1]} : vector<16x16xf32> to vector<1x16xf32>
    %440 = arith.subf %427, %439 : vector<1x16xf32>
    %cst_105 = arith.constant 0.000000e+00 : f32
    %441 = vector.shape_cast %440 : vector<1x16xf32> to vector<1x16xf32>
    %442 = vector.broadcast %441 : vector<1x16xf32> to vector<16x16xf32>
    %443 = vector.broadcast %cst_105 : f32 to vector<16x16xf32>
    %444 = arith.select %38, %442, %443 : vector<16x16xi1>, vector<16x16xf32>
    %445 = arith.addf %438, %444 : vector<16x16xf32>
    %cst_106 = arith.constant 0.111111112 : f32
    %446 = vector.broadcast %cst_106 : f32 to vector<16x16xf32>
    %447 = arith.mulf %445, %446 : vector<16x16xf32>
    %448 = arith.mulf %118, %118 : vector<16x16xf32>
    %449 = arith.mulf %198, %198 : vector<16x16xf32>
    %450 = arith.mulf %118, %198 : vector<16x16xf32>
    %451 = arith.subf %281, %448 : vector<16x16xf32>
    %452 = arith.subf %364, %449 : vector<16x16xf32>
    %453 = arith.subf %447, %450 : vector<16x16xf32>
    %cst_107 = arith.constant 2.000000e+00 : f32
    %454 = vector.broadcast %cst_107 : f32 to vector<16x16xf32>
    %455 = arith.mulf %454, %450 : vector<16x16xf32>
    %cst_108 = arith.constant 9.99999974E-5 : f32
    %456 = vector.broadcast %cst_108 : f32 to vector<16x16xf32>
    %457 = arith.addf %455, %456 : vector<16x16xf32>
    %cst_109 = arith.constant 2.000000e+00 : f32
    %458 = vector.broadcast %cst_109 : f32 to vector<16x16xf32>
    %459 = arith.mulf %458, %453 : vector<16x16xf32>
    %cst_110 = arith.constant 8.99999984E-4 : f32
    %460 = vector.broadcast %cst_110 : f32 to vector<16x16xf32>
    %461 = arith.addf %459, %460 : vector<16x16xf32>
    %462 = arith.mulf %457, %461 : vector<16x16xf32>
    %463 = arith.addf %448, %449 : vector<16x16xf32>
    %cst_111 = arith.constant 9.99999974E-5 : f32
    %464 = vector.broadcast %cst_111 : f32 to vector<16x16xf32>
    %465 = arith.addf %463, %464 : vector<16x16xf32>
    %466 = arith.addf %451, %452 : vector<16x16xf32>
    %cst_112 = arith.constant 8.99999984E-4 : f32
    %467 = vector.broadcast %cst_112 : f32 to vector<16x16xf32>
    %468 = arith.addf %466, %467 : vector<16x16xf32>
    %469 = arith.mulf %465, %468 : vector<16x16xf32>
    %470 = tpu.reciprocal %469 {approx = true} : vector<16x16xf32> -> vector<16x16xf32>
    %471 = arith.mulf %462, %470 : vector<16x16xf32>
    %cst_113 = arith.constant 1.000000e+00 : f32
    %472 = vector.broadcast %cst_113 : f32 to vector<16x16xf32>
    %473 = arith.subf %472, %471 : vector<16x16xf32>
    %cst_114 = arith.constant 5.000000e-01 : f32
    %474 = vector.broadcast %cst_114 : f32 to vector<16x16xf32>
    %475 = arith.mulf %473, %474 : vector<16x16xf32>
    %cst_115 = arith.constant 0.000000e+00 : f32
    %cst_116 = arith.constant 1.000000e+00 : f32
    %476 = vector.broadcast %cst_115 : f32 to vector<16x16xf32>
    %477 = arith.maximumf %476, %475 : vector<16x16xf32>
    %478 = vector.broadcast %cst_116 : f32 to vector<16x16xf32>
    %479 = arith.minimumf %478, %477 : vector<16x16xf32>
    %c0_117 = arith.constant 0 : index
    %c0_118 = arith.constant 0 : index
    %c0_119 = arith.constant 0 : index
    %480 = vector.load %arg8[%c0_117, %c0_118, %c0_119] : memref<1x16x16xf32, #tpu.memory_space<vmem>>, vector<1x16x16xf32>
    %481 = vector.shape_cast %480 : vector<1x16x16xf32> to vector<16x16xf32>
    %482 = vector.shape_cast %479 : vector<16x16xf32> to vector<1x16x16xf32>
    tpu.vector_store %arg8[%c0_117, %c0_118, %c0_119], %482 {strides = array<i32>} : memref<1x16x16xf32, #tpu.memory_space<vmem>>, vector<1x16x16xf32>,
    return
  }
  func.func @transform_0(%arg0: i32, %arg1: i32) -> (i32, i32, i32) {
    %c0_i32 = arith.constant 0 : i32
    %c0_i32_0 = arith.constant 0 : i32
    return %arg0, %arg1, %c0_i32 : i32, i32, i32
  }
  func.func @transform_1(%arg0: i32, %arg1: i32) -> (i32, i32, i32) {
    %c2_i32 = arith.constant 2 : i32
    %0 = arith.muli %arg1, %c2_i32 : i32
    %c1_i32 = arith.constant 1 : i32
    %1 = arith.subi %0, %c1_i32 : i32
    %c0_i32 = arith.constant 0 : i32
    %2 = arith.maxsi %1, %c0_i32 : i32
    %c0_i32_0 = arith.constant 0 : i32
    %c0_i32_1 = arith.constant 0 : i32
    return %arg0, %2, %c0_i32_0 : i32, i32, i32
  }
  func.func @transform_2(%arg0: i32, %arg1: i32) -> (i32, i32, i32) {
    %c1_i32 = arith.constant 1 : i32
    %0 = arith.addi %arg1, %c1_i32 : i32
    %c2_i32 = arith.constant 2 : i32
    %1 = arith.muli %0, %c2_i32 : i32
    %c1_i32_0 = arith.constant 1 : i32
    %2 = arith.minsi %1, %c1_i32_0 : i32
    %c0_i32 = arith.constant 0 : i32
    %c0_i32_1 = arith.constant 0 : i32
    return %arg0, %2, %c0_i32 : i32, i32, i32
  }
  func.func @transform_3(%arg0: i32, %arg1: i32) -> (i32, i32, i32) {
    %c0_i32 = arith.constant 0 : i32
    %c0_i32_0 = arith.constant 0 : i32
    return %arg0, %arg1, %c0_i32 : i32, i32, i32
  }
  func.func @transform_4(%arg0: i32, %arg1: i32) -> (i32, i32, i32) {
    %c2_i32 = arith.constant 2 : i32
    %0 = arith.muli %arg1, %c2_i32 : i32
    %c1_i32 = arith.constant 1 : i32
    %1 = arith.subi %0, %c1_i32 : i32
    %c0_i32 = arith.constant 0 : i32
    %2 = arith.maxsi %1, %c0_i32 : i32
    %c0_i32_0 = arith.constant 0 : i32
    %c0_i32_1 = arith.constant 0 : i32
    return %arg0, %2, %c0_i32_0 : i32, i32, i32
  }
  func.func @transform_5(%arg0: i32, %arg1: i32) -> (i32, i32, i32) {
    %c1_i32 = arith.constant 1 : i32
    %0 = arith.addi %arg1, %c1_i32 : i32
    %c2_i32 = arith.constant 2 : i32
    %1 = arith.muli %0, %c2_i32 : i32
    %c1_i32_0 = arith.constant 1 : i32
    %2 = arith.minsi %1, %c1_i32_0 : i32
    %c0_i32 = arith.constant 0 : i32
    %c0_i32_1 = arith.constant 0 : i32
    return %arg0, %2, %c0_i32 : i32, i32, i32
  }
  func.func @transform_6(%arg0: i32, %arg1: i32) -> (i32, i32, i32) {
    %c0_i32 = arith.constant 0 : i32
    %c0_i32_0 = arith.constant 0 : i32
    return %arg0, %arg1, %c0_i32 : i32, i32, i32
  }
}

</mosaic_0001>

<bundles_post_ra>
// kernel: tpu_custom_call.1
= control target key start
LH: loop header
LB: loop body
LE: loop exit
PB: predicated region body
PF: predicated region fallthrough
CT: control target
= control target key end

     0   :  { %s3604_s0 = inlined_call_operand.hbm [shape: f32[8,16,16], index: 0, kind: input, shape index: {}]   ;;  %s3605_s1 = inlined_call_operand.hbm [shape: f32[8,16,16], index: 1, kind: input, shape index: {}]   ;;  %s3606_s2 = inlined_call_operand.hbm [shape: f32[8,16,16], index: 2, kind: input, shape index: {}]   ;;  %s3607_s3 = inlined_call_operand.hbm [shape: f32[8,16,16], index: 3, kind: input, shape index: {}]   ;;  %s3608_s4 = inlined_call_operand.hbm [shape: f32[8,16,16], index: 4, kind: input, shape index: {}]   ;;  %s3609_s5 = inlined_call_operand.hbm [shape: f32[8,16,16], index: 5, kind: input, shape index: {}]   ;;  %s3610_s6 = inlined_call_operand.hbm [shape: f32[8,16,16], index: 6, kind: output, shape index: {}]  }
   0x1   :  { %3630 = sst [smem:[#allocation26_spill]] %s3605_s1 }
   0x2   :  { %3631 = sst [smem:[#allocation27_spill]] %s3607_s3 }
   0x3   :  { %11 = vsyncpa [#allocation3], 0 }
   0x4   :  { %13 = vsyncpa [#allocation3 + $0x1], 0 }
   0x5   :  { %14 = vsyncpa [#allocation6], 0 }
   0x6   :  { %16 = vsyncpa [#allocation6 + $0x1], 0 }
   0x7   :  { %17 = vsyncpa [#allocation9], 0 }
   0x8   :  { %19 = vsyncpa [#allocation9 + $0x1], 0 }
   0x9   :  { %20 = vsyncpa [#allocation12], 0 }
   0xa   :  { %22 = vsyncpa [#allocation12 + $0x1], 0 }
   0xb   :  { %23 = vsyncpa [#allocation4], 0 }
   0xc   :  { %25 = vsyncpa [#allocation4 + $0x1], 0  ;;  %s2362_s21 = smov 0   ;;  %s2364_s22 = smov 0  }
   0xd   :  { %s2366_s23 = smov 0   ;;  %s2368_s24 = smov 0  }
   0xe   :  { %s2370_s25 = smov 0   ;;  %s2372_s26 = smov 0  }
   0xf LB: > { %3632 = sst [smem:[#allocation19_spill]] %s2287_s21  ;;  %s2393_s27 = sadd.s32 4294967295, %s2307_s26   ;;  %s2307_s26 = sphi %s2372_s26, %s31_s26   ;;  %s2303_s25 = sphi %s2370_s25, %s3668_s25   ;;  %s2299_s24 = sphi %s2368_s24, %s3667_s24   ;;  %s2295_s23 = sphi %s2366_s23, %s3666_s23   ;;  %s2291_s22 = sphi %s2364_s22, %s3670_s22   ;;  %s2287_s21 = sphi %s2362_s21, %s3669_s21  }
  0x10   : > { %3633 = sst [smem:[#allocation20_spill]] %s2295_s23  ;;  %s1862_s28 = sadd.s32 4294967294, %s2307_s26  }
  0x11   : > { %3634 = sst [smem:[#allocation21_spill]] %s2303_s25  ;;  %s43_s29 = sadd.s32 1, %s2303_s25 }
  0x12   : > { %3635 = sst [smem:[#allocation22_spill]] %s2307_s26  ;;  %s52_s30 = sadd.s32 1, %s2295_s23 }
  0x13   : > { %p45_p0 = scmp.ge.s32.totalorder %s43_s29, 8  ;;  %p59_p1 = scmp.ne.s32.totalorder %s2295_s23, %s2291_s22 }
  0x14   : > { %p60_p2 = scmp.eq.s32.totalorder %s2307_s26, 0  ;;  %p65_p3 = scmp.ne.s32.totalorder %s2291_s22, %s2287_s21 }
  0x15   : > { %s3672_s29 = smov (%p45_p0, %s43_s29), 0  ;;  %p66_p5 = scmp.eq.s32.totalorder %s2393_s27, 0 }
  0x16   : > { %3636 = sst [smem:[#allocation23_spill]] %s3672_s29  ;;  %p2405_p4 = por %p60_p2, %p59_p1 }
  0x17   : > { %s47_s8 = ssub.s32 %s2303_s25, %s3672_s29  ;;  %p263_p6 = scmp.eq.s32.totalorder %s2393_s27, 7 }
  0x18   : > { %p50_p7 = scmp.eq.s32.totalorder %s47_s8, 0  ;;  %p2413_p8 = por %p66_p5, %p65_p3 }
  0x19   : > { %p2417_p9 = por %p263_p6, %p59_p1  ;;  %p269_p10 = scmp.eq.s32.totalorder %s1862_s28, 7 }
  0x1a   : > { %s3638_s9 = scalar_select %p2413_p8, 1, 0 }
  0x1b   : > { %s3639_s10 = scalar_select %p2417_p9, 1, 0 }
  0x1c   : > { %s2422_s11 = scalar_select %p50_p7, %s2295_s23, %s52_s30  }
  0x1d   : > { %p2424_p11 = por %p269_p10, %p65_p3  ;;  %p1944_p12 = scmp.lt.s32.totalorder %s2307_s26, 8 }
  0x1e   : > { %3640 = sst [smem:[#allocation24_spill]] %s2422_s11  ;;  %s2430_s13 = sand.u32 1, %s2295_s23  }
  0x1f   : > { %s3641_s12 = scalar_select %p2424_p11, 1, 0 }
  0x20   : > { %s2433_s14 = sshll.u32 %s2303_s25, 8  ;;  %s3613_s15 = sand.u32 1, %s2307_s26  }
  0x21   : > { %3642 = sst [smem:[#allocation25_spill]] %s3641_s12  ;;  %p2438_p13 = pnand %p1944_p12, %p2405_p4 }
  0x22   : > { %s2443_s17 = sshll.u32 %s2430_s13, 3  ;;  %s3644_s1 = sld [smem:[#allocation26_spill]] }
  0x23   : > { %s3643_s16 = scalar_select %p2438_p13, 1, 0 }
  0x24   : > { %s316_s28 = scalar_lea.vmem [#allocation5], %s2443_s17  ;;  %s2457_s7 = scalar_lea.sflag [#allocation6], %s3613_s15 }
  0x25   : > { %s329_s30 = sshll.u32 %s316_s28, 4  ;;  %p2463_p2 = pneg %p2438_p13  ;;  %s2452_s30 = int_to_ptr.vmem [resolvable:$true] %s329_s30 }
  0x28   : > { %s2449_s20 = scalar_lea.hbm %s3644_s1, %s2433_s14  ;;  %s2038_s28 = scalar_lea.hbm %s3644_s1, 2048 }
  0x29   : > { %s2033_s8 = scalar_lea.hbm %s2449_s20, 128  ;;  %p2039_p5 = scmp.lt.u32.totalorder %s2449_s20, %s3644_s1 }
  0x2a   : > { %p2034_p1 = scmp.ne.s32.totalorder %s2449_s20, %s2033_s8  ;;  %p2040_p6 = scmp.lt.u32.totalorder %s2038_s28, %s2033_s8 }
  0x2b   : > { %p2042_p10 = scmp.lt.u32.totalorder %s2033_s8, %s2449_s20 }
  0x2c   : > { %p2036_p3 = pnand %p2463_p2, %p2034_p1  ;;  %p2041_p7 = por %p2040_p6, %p2039_p5 }
  0x2e   : > { %p2037_p4 = pneg %p2036_p3  ;;  %p2043_p12 = por %p2042_p10, %p2041_p7 }
  0x30   : > { %p2044_p0 = pnand %p2043_p12, %p2037_p4 }
  0x32   : > { %2047 = shalt.err (!%p2044_p0)
}
  0x33   : > { %s2048_s15 = scalar_lea.vmem %s2452_s30, 128  ;;  %s2309_s29 = smov [#allocation5]  }
  0x34   : > { %p2049_p1 = scmp.ne.s32.totalorder %s2452_s30, %s2048_s15  ;;  %s2053_s19 = sshll.u32 %s2309_s29, 4  ;;  %s2054_s19 = int_to_ptr.vmem [resolvable:$false] %s2053_s19 }
  0x35   : > { %s2055_s25 = scalar_lea.vmem %s2054_s19, 256  ;;  %p2056_p9 = scmp.lt.s32.totalorder %s2452_s30, %s2054_s19 }
  0x36   : > { %p2051_p3 = pnand %p2049_p1, %p2463_p2  ;;  %p2057_p8 = scmp.lt.s32.totalorder %s2055_s25, %s2048_s15 }
  0x38   : > { %p2052_p11 = pneg %p2051_p3  ;;  %p2058_p5 = por %p2057_p8, %p2056_p9 }
  0x3a   : > { %p2059_p6 = pnand %p2058_p5, %p2052_p11 }
  0x3c   : > { %2062 = shalt.err (!%p2059_p6)
}
  0x3d   : > { %1927 = dma.hbm_to_vmem [thread:$0]  (!%p2438_p13), %s2449_s20, 128, %s2452_s30, %s2457_s7  }
  0x3e   : > { %p429_p0 = scmp.lt.s32.totalorder %s2307_s26, 9  ;;  %s1865_s11 = sshll.u32 %s2430_s13, 4 }
  0x3f   : > { %p3646_p4 = scmp.ge.s32.totalorder %s2307_s26, 1  ;;  %s3648_s3 = sld [smem:[#allocation27_spill]] }
  0x40   : > { %s364_s19 = scalar_lea.vmem [#allocation8], %s1865_s11  ;;  %s3649_s20 = sand.u32 1, %s2307_s26  }
  0x41   : > { %p2491_p7 = pnand %p3646_p4, %p429_p0  ;;  %s373_s25 = sshll.u32 %s364_s19, 4  ;;  %s2503_s25 = int_to_ptr.vmem [resolvable:$true] %s373_s25 }
  0x42   : > { %s2507_s30 = scalar_lea.sflag [#allocation9], %s3649_s20 }
  0x43   : > { %s3647_s15 = scalar_select %p2491_p7, 1, 0 }
  0x45   : > { %s2499_s29 = scalar_lea.hbm %s3648_s3, %s2433_s14  ;;  %s2068_s23 = scalar_lea.hbm %s3648_s3, 2048 }
  0x46   : > { %s2063_s1 = scalar_lea.hbm %s2499_s29, 256  ;;  %p2069_p10 = scmp.lt.u32.totalorder %s2499_s29, %s3648_s3 }
  0x47   : > { %p2064_p8 = scmp.ne.s32.totalorder %s2499_s29, %s2063_s1  ;;  %p2070_p12 = scmp.lt.u32.totalorder %s2068_s23, %s2063_s1 }
  0x48   : > { %p2072_p3 = scmp.lt.u32.totalorder %s2063_s1, %s2499_s29 }
  0x49   : > { %p2066_p9 = pnand %p2064_p8, %p2463_p2  ;;  %p2071_p1 = por %p2070_p12, %p2069_p10 }
  0x4b   : > { %p2067_p11 = pneg %p2066_p9  ;;  %p2073_p5 = por %p2072_p3, %p2071_p1 }
  0x4d   : > { %p2074_p6 = pnand %p2073_p5, %p2067_p11 }
  0x4f   : > { %2077 = shalt.err (!%p2074_p6)
}
  0x50   : > { %s2078_s19 = scalar_lea.vmem %s2503_s25, 256  ;;  %s2310_s20 = smov [#allocation8]  }
  0x51   : > { %p2079_p0 = scmp.ne.s32.totalorder %s2503_s25, %s2078_s19  ;;  %s2083_s8 = sshll.u32 %s2310_s20, 4  ;;  %s2084_s8 = int_to_ptr.vmem [resolvable:$false] %s2083_s8 }
  0x52   : > { %s2085_s21 = scalar_lea.vmem %s2084_s8, 512  ;;  %p2086_p9 = scmp.lt.s32.totalorder %s2503_s25, %s2084_s8 }
  0x53   : > { %p2081_p4 = pnand %p2079_p0, %p2463_p2  ;;  %p2087_p7 = scmp.lt.s32.totalorder %s2085_s21, %s2078_s19 }
  0x55   : > { %p2082_p8 = pneg %p2081_p4  ;;  %p2088_p10 = por %p2087_p7, %p2086_p9 }
  0x57   : > { %p2089_p12 = pnand %p2088_p10, %p2082_p8 }
  0x59   : > { %2092 = shalt.err (!%p2089_p12)
}
  0x5a   : > { %s3621_s1 = smov 128   ;;  %s2312_s23 = smov 8  }
  0x5b   : > { %1933 = dma.hbm_to_vmem [thread:$0]  (!%p2438_p13), %s2499_s29, 256, %s2503_s25, %s2507_s30, %s3621_s1, %s3621_s1, %s2312_s23  }
  0x5c   : > { %s2538_s19 = scalar_lea.hbm %s3604_s0, %s2433_s14  ;;  %s293_s20 = scalar_lea.vmem [#allocation2], %s1865_s11 }
  0x5d   : > { %s302_s8 = sshll.u32 %s293_s20, 4  ;;  %s1899_s21 = sadd.s32 128, %s2433_s14  ;;  %s2542_s8 = int_to_ptr.vmem [resolvable:$true] %s302_s8 }
  0x5e   : > { %s290_s3 = scalar_lea.sflag [#allocation3], %s2430_s13  ;;  %s2093_s26 = scalar_lea.hbm %s2538_s19, 256 }
  0x5f   : > { %p2094_p7 = scmp.ne.s32.totalorder %s2538_s19, %s2093_s26  ;;  %s2098_s12 = scalar_lea.hbm %s3604_s0, 2048 }
  0x60   : > { %p2099_p3 = scmp.lt.u32.totalorder %s2538_s19, %s3604_s0  ;;  %p2100_p5 = scmp.lt.u32.totalorder %s2098_s12, %s2093_s26 }
  0x61   : > { %p2096_p11 = pnand %p2094_p7, %p2463_p2  ;;  %p2102_p0 = scmp.lt.u32.totalorder %s2093_s26, %s2538_s19 }
  0x62   : > { %p2101_p6 = por %p2100_p5, %p2099_p3 }
  0x63   : > { %p2097_p1 = pneg %p2096_p11 }
  0x64   : > { %p2103_p4 = por %p2102_p0, %p2101_p6 }
  0x66   : > { %p2104_p8 = pnand %p2103_p4, %p2097_p1 }
  0x68   : > { %2107 = shalt.err (!%p2104_p8)
}
  0x69   : > { %s2108_s11 = scalar_lea.vmem %s2542_s8, 256  ;;  %s2313_s20 = smov [#allocation2]  }
  0x6a   : > { %p2109_p9 = scmp.ne.s32.totalorder %s2542_s8, %s2108_s11  ;;  %s2113_s29 = sshll.u32 %s2313_s20, 4  ;;  %s2114_s29 = int_to_ptr.vmem [resolvable:$false] %s2113_s29 }
  0x6b   : > { %s2115_s1 = scalar_lea.vmem %s2114_s29, 512  ;;  %p2116_p7 = scmp.lt.s32.totalorder %s2542_s8, %s2114_s29 }
  0x6c   : > { %p2111_p10 = pnand %p2109_p9, %p2463_p2  ;;  %p2117_p11 = scmp.lt.s32.totalorder %s2115_s1, %s2108_s11 }
  0x6e   : > { %p2112_p12 = pneg %p2111_p10  ;;  %p2118_p3 = por %p2117_p11, %p2116_p7 }
  0x70   : > { %p2119_p5 = pnand %p2118_p3, %p2112_p12 }
  0x72   : > { %2122 = shalt.err (!%p2119_p5)
}
  0x73   : > { %s3650_s26 = smov 128   ;;  %s2577_s28 = scalar_lea.hbm %s3606_s2, %s1899_s21 }
  0x74   : > { %1924 = dma.hbm_to_vmem [thread:$0]  (!%p2438_p13), %s2538_s19, 256, %s2542_s8, %s290_s3, %s3650_s26, %s3650_s26, %s2312_s23  }
  0x75   : > { %s340_s11 = scalar_lea.vmem [#allocation7], %s2443_s17  ;;  %s2123_s29 = scalar_lea.hbm %s2577_s28, 128 }
  0x76   : > { %s353_s20 = sshll.u32 %s340_s11, 4  ;;  %p2124_p1 = scmp.ne.s32.totalorder %s2577_s28, %s2123_s29  ;;  %s354_s20 = int_to_ptr.vmem [resolvable:$true] %s353_s20 }
  0x77   : > { %s2128_s23 = scalar_lea.hbm %s3606_s2, 2048  ;;  %p2129_p4 = scmp.lt.u32.totalorder %s2577_s28, %s3606_s2 }
  0x78   : > { %p2126_p6 = pnand %p2124_p1, %p2463_p2  ;;  %p2130_p8 = scmp.lt.u32.totalorder %s2128_s23, %s2123_s29 }
  0x79   : > { %p2132_p10 = scmp.lt.u32.totalorder %s2123_s29, %s2577_s28 }
  0x7a   : > { %p2127_p0 = pneg %p2126_p6  ;;  %p2131_p9 = por %p2130_p8, %p2129_p4 }
  0x7c   : > { %p2133_p12 = por %p2132_p10, %p2131_p9 }
  0x7e   : > { %p2134_p7 = pnand %p2133_p12, %p2127_p0 }
  0x80   : > { %2137 = shalt.err (!%p2134_p7)
}
  0x81   : > { %s2138_s26 = scalar_lea.vmem %s354_s20, 128  ;;  %s2314_s25 = smov [#allocation7]  }
  0x82   : > { %p2139_p11 = scmp.ne.s32.totalorder %s354_s20, %s2138_s26  ;;  %s2143_s12 = sshll.u32 %s2314_s25, 4  ;;  %s2144_s12 = int_to_ptr.vmem [resolvable:$false] %s2143_s12 }
  0x83   : > { %s2145_s11 = scalar_lea.vmem %s2144_s12, 256  ;;  %p2146_p1 = scmp.lt.s32.totalorder %s354_s20, %s2144_s12 }
  0x84   : > { %p2141_p3 = pnand %p2139_p11, %p2463_p2  ;;  %p2147_p6 = scmp.lt.s32.totalorder %s2145_s11, %s2138_s26 }
  0x86   : > { %p2142_p5 = pneg %p2141_p3  ;;  %p2148_p13 = por %p2147_p6, %p2146_p1 }
  0x88   : > { %p2149_p4 = pnand %p2148_p13, %p2142_p5 }
  0x8a   : > { %2152 = shalt.err (!%p2149_p4)
}
  0x8b   : > { %p3651_p8 = scmp.ne.s32.totalorder %s3643_s16, 0  ;;  %s2602_s3 = scalar_lea.hbm %s3608_s4, %s2433_s14 }
  0x8c   : > { %s387_s23 = scalar_lea.vmem [#allocation10], %s2443_s17  ;;  %s2153_s8 = scalar_lea.hbm %s2602_s3, 128 }
  0x8d   : > { %1930 = dma.hbm_to_vmem [thread:$0]  (!%p3651_p8), %s2577_s28, 128, %s354_s20, %s2457_s7  }
  0x8e   : > { %s400_s19 = sshll.u32 %s387_s23, 4  ;;  %p2154_p13 = scmp.ne.s32.totalorder %s2602_s3, %s2153_s8  ;;  %s401_s19 = int_to_ptr.vmem [resolvable:$true] %s400_s19 }
  0x8f   : > { %s2158_s7 = scalar_lea.hbm %s3608_s4, 2048  ;;  %p2159_p10 = scmp.lt.u32.totalorder %s2602_s3, %s3608_s4 }
  0x90   : > { %p2156_p0 = pnand %p2154_p13, %p2463_p2  ;;  %p2160_p12 = scmp.lt.u32.totalorder %s2158_s7, %s2153_s8 }
  0x91   : > { %p2162_p11 = scmp.lt.u32.totalorder %s2153_s8, %s2602_s3 }
  0x92   : > { %p2157_p9 = pneg %p2156_p0  ;;  %p2161_p7 = por %p2160_p12, %p2159_p10 }
  0x94   : > { %p2163_p3 = por %p2162_p11, %p2161_p7 }
  0x96   : > { %p2164_p5 = pnand %p2163_p3, %p2157_p9 }
  0x98   : > { %2167 = shalt.err (!%p2164_p5)
}
  0x99   : > { %s2168_s12 = scalar_lea.vmem %s401_s19, 128  ;;  %s2315_s11 = smov [#allocation10]  }
  0x9a   : > { %p2169_p1 = scmp.ne.s32.totalorder %s401_s19, %s2168_s12  ;;  %s2173_s29 = sshll.u32 %s2315_s11, 4  ;;  %s2174_s29 = int_to_ptr.vmem [resolvable:$false] %s2173_s29 }
  0x9b   : > { %s2175_s1 = scalar_lea.vmem %s2174_s29, 256  ;;  %p2176_p13 = scmp.lt.s32.totalorder %s401_s19, %s2174_s29 }
  0x9c   : > { %p2171_p6 = pnand %p2169_p1, %p2463_p2  ;;  %p2177_p0 = scmp.lt.s32.totalorder %s2175_s1, %s2168_s12 }
  0x9e   : > { %p2172_p4 = pneg %p2171_p6  ;;  %p2178_p8 = por %p2177_p0, %p2176_p13 }
  0xa0   : > { %p2179_p10 = pnand %p2178_p8, %p2172_p4 }
  0xa2   : > { %2182 = shalt.err (!%p2179_p10)
}
  0xa3   : > { %p3652_p12 = scmp.ne.s32.totalorder %s3643_s16, 0  ;;  %s2628_s26 = scalar_lea.hbm %s3609_s5, %s1899_s21 }
  0xa4   : > { %s411_s25 = scalar_lea.vmem [#allocation11], %s2443_s17  ;;  %s408_s28 = scalar_lea.sflag [#allocation12], %s2430_s13 }
  0xa5   : > { %1936 = dma.hbm_to_vmem [thread:$0]  (!%p3652_p12), %s2602_s3, 128, %s401_s19, %s2507_s30  }
  0xa6   : > { %s424_s7 = sshll.u32 %s411_s25, 4  ;;  %s2183_s20 = scalar_lea.hbm %s2628_s26, 128  ;;  %s425_s7 = int_to_ptr.vmem [resolvable:$true] %s424_s7 }
  0xa7   : > { %p2184_p8 = scmp.ne.s32.totalorder %s2628_s26, %s2183_s20  ;;  %s2188_s3 = scalar_lea.hbm %s3609_s5, 2048 }
  0xa8   : > { %p2189_p11 = scmp.lt.u32.totalorder %s2628_s26, %s3609_s5  ;;  %p2190_p3 = scmp.lt.u32.totalorder %s2188_s3, %s2183_s20 }
  0xa9   : > { %p2186_p9 = pnand %p2184_p8, %p2463_p2  ;;  %p2192_p1 = scmp.lt.u32.totalorder %s2183_s20, %s2628_s26 }
  0xaa   : > { %p2191_p5 = por %p2190_p3, %p2189_p11 }
  0xab   : > { %p2187_p7 = pneg %p2186_p9 }
  0xac   : > { %p2193_p6 = por %p2192_p1, %p2191_p5 }
  0xae   : > { %p2194_p4 = pnand %p2193_p6, %p2187_p7 }
  0xb0   : > { %2197 = shalt.err (!%p2194_p4)
}
  0xb1   : > { %s2198_s13 = scalar_lea.vmem %s425_s7, 128  ;;  %s2316_s17 = smov [#allocation11]  }
  0xb2   : > { %p2199_p13 = scmp.ne.s32.totalorder %s425_s7, %s2198_s13  ;;  %s2203_s12 = sshll.u32 %s2316_s17, 4  ;;  %s2204_s12 = int_to_ptr.vmem [resolvable:$false] %s2203_s12 }
  0xb3   : > { %s2205_s11 = scalar_lea.vmem %s2204_s12, 256  ;;  %p2206_p8 = scmp.lt.s32.totalorder %s425_s7, %s2204_s12 }
  0xb4   : > { %p2201_p0 = pnand %p2199_p13, %p2463_p2  ;;  %p2207_p9 = scmp.lt.s32.totalorder %s2205_s11, %s2198_s13 }
  0xb6   : > { %p2202_p10 = pneg %p2201_p0  ;;  %p2208_p12 = por %p2207_p9, %p2206_p8 }
  0xb8   : > { %p2209_p3 = pnand %p2208_p12, %p2202_p10 }
  0xba   : > { %2212 = shalt.err (!%p2209_p3)
}
  0xbb   : > { %p3653_p11 = scmp.ne.s32.totalorder %s3643_s16, 0  ;;  %p3654_p7 = scmp.ne.s32.totalorder %s3647_s15, 0 }
  0xbc   : > { %s2652_s18 = sand.u32 (!%p3654_p7), 1, %s2291_s22   ;;  %p3655_p2 = scmp.ne.s32.totalorder (!%p3654_p7), %s3638_s9, 0 }
  0xbd   : > { %1939 = dma.hbm_to_vmem [thread:$0]  (!%p3653_p11), %s2628_s26, 128, %s425_s7, %s408_s28  }
  0xbe   : > { %433 = sbr.rel (%p3654_p7) target bundleno = 1232 (0x4d0), region = 44  ;;  %s2655_s29 = sshll.u32 (!%p3654_p7), %s2652_s18, 4 }
  0xbf   : > { %s436_s1 = scalar_lea.sflag (!%p3654_p7), [#allocation3], %s2652_s18  ;;  %s439_s23 = scalar_lea.vmem (!%p3654_p7), [#allocation2], %s2655_s29 }
  0xc5   : > { %2266 = dma.done.wait (%p3655_p2), %s436_s1, 256  }
  0xc6   : > { %2268 = vsyncadd (%p3655_p2), %s436_s1, 4294967040  ;;  %s444_s16 = sand.u32 1, %s2393_s27  }
  0xc7   : > { %s445_s15 = scalar_lea.sflag [#allocation6], %s444_s16 }
  0xc8   : > { %2270 = dma.done.wait (%p3655_p2), %s445_s15, 256  }
  0xc9   : > { %2272 = vsyncadd (%p3655_p2), %s445_s15, 4294967040  ;;  %s463_s8 = scalar_lea.sflag [#allocation9], %s444_s16  ;;  %s466_s26 = scalar_lea.vmem [#allocation8], %s2655_s29 }
  0xca   : > { %2274 = dma.done.wait (%p3655_p2), %s463_s8, 384  }
  0xcb   : > { %2276 = vsyncadd (%p3655_p2), %s463_s8, 4294966912  ;;  %s481_s25 = scalar_lea.sflag [#allocation12], %s2652_s18 }
  0xcc   : > { %2278 = dma.done.wait (%p3655_p2), %s481_s25, 128  }
  0xcd   : > { %2280 = vsyncadd (%p3655_p2), %s481_s25, 4294967168  ;;  %v2678_v0 = vld [vmem:[%s439_s23 + $0x8] sm:$0xff]  ;;  %v2680_v1 = vld [vmem:[%s439_s23] sm:$0xff]  ;;  %s2317_s27 = smov 114   ;;  %s2318_s7 = smov 16   ;;  %v3627_v2 = vmov 1  }
  0xce   : > { %631 = vrot.lane.b32.xlu1 %v2678_v0, %s2317_s27  ;;  %597 = vrot.lane.b32.xlu0 %v2680_v1, %s2318_s7  ;;  %s2320_s28 = smov 14   ;;  %v2693_v3 = vrot.slane %v2680_v1, 1  ;;  %v2699_v4 = vld [vmem:[%s466_s26 + $0x8] sm:$0xff]  ;;  %v2709_v5 = vld [vmem:[%s466_s26] sm:$0xff]  ;;  %v2714_v6 = vrot.slane %v2678_v0, 6  ;;  %v2727_v8 = vmul.f32 %v2678_v0, %v2678_v0  ;;  %v2778_v14 = vmul.f32 %v2680_v1, %v2680_v1  ;;  %s2322_s9 = smov 113  }
  0xcf   : > { %2006 = vset.pattern.permute.xlu1 %v3627_v2  ;;  %2005 = vset.pattern.permute.xlu0 %v3627_v2  ;;  %v2719_v7 = vrot.slane %v2709_v5, 1  ;;  %v2742_v10 = vmul.f32 %v2699_v4, %v2699_v4  ;;  %v2757_v12 = vmul.f32 %v2699_v4, %v2678_v0  ;;  %v2768_v13 = vrot.slane %v2699_v4, 6  ;;  %s2323_s20 = smov 127   ;;  %s537_s30 = scalar_lea.vmem [#allocation13], %s2655_s29 }
  0xd0   : > { %v2734_v9 = vrot.slane %v2727_v8, 6  ;;  %v2783_v15 = vrot.slane %v2778_v14, 1  ;;  %v2789_v16 = vmul.f32 %v2709_v5, %v2709_v5  ;;  %v2800_v18 = vmul.f32 %v2709_v5, %v2680_v1  ;;  %s1904_s14 = sshll.u32 %s2299_s24, 8  ;;  %s1654_s3 = sshll.u32 %s537_s30, 4  ;;  %s3556_s3 = int_to_ptr.vmem [resolvable:$true] %s1654_s3 }
  0xd1   : > { %v2749_v11 = vrot.slane %v2742_v10, 6  ;;  %vm596_vm0 = vcmask 1047680   ;;  %v3624_v35 = vmov 14   ;;  %vm1635_vm7 = vcmask 130048   ;;  %s3554_s13 = scalar_lea.hbm %s3610_s6, %s1904_s14  ;;  %s1639_s17 = scalar_lea.sflag [#allocation4], %s2652_s18 }
  0xd2   : > { %651 = vrot.lane.b32.xlu1 %v2680_v1, %s2320_s28  ;;  %600 = vrot.lane.b32.xlu0 %v2678_v0, %s2318_s7  ;;  %v2794_v17 = vrot.slane %v2789_v16, 1  ;;  %v2805_v19 = vrot.slane %v2800_v18, 1  ;;  %s2213_s12 = scalar_lea.vmem %s3556_s3, 256  ;;  %p3660_p5 = scmp.ne.s32.totalorder %s3639_s10, 0 }
  0xd3   : > { %p2214_p12 = scmp.ne.s32.totalorder %s3556_s3, %s2213_s12  ;;  %s2324_s24 = smov [#allocation13]  }
  0xd4   : > { %s2217_s11 = sshll.u32 %s2324_s24, 4  ;;  %s2218_s11 = int_to_ptr.vmem [resolvable:$false] %s2217_s11 }
  0xd5   : > { %p2215_p1 = pnand %p2214_p12, %p3660_p5  ;;  %s2219_s29 = scalar_lea.vmem %s2218_s11, 512 }
  0xd6   : > { %629 = vrot.lane.b32.xlu0 %v2680_v1, %s2317_s27  ;;  %676 = vrot.lane.b32.xlu1 %v2693_v3, %s2318_s7  ;;  %p2220_p4 = scmp.lt.s32.totalorder %s3556_s3, %s2218_s11  ;;  %p2221_p13 = scmp.lt.s32.totalorder %s2219_s29, %s2213_s12 }
  0xd7   : > { %p2216_p6 = pneg %p2215_p1 }
  0xd8   : > { %p2222_p0 = por %p2221_p13, %p2220_p4 }
  0xda   : > { %653 = vrot.lane.b32.xlu0 %v2678_v0, %s2320_s28  ;;  %798 = vrot.lane.b32.xlu1 %v2699_v4, %s2318_s7  ;;  %p2223_p10 = pnand %p2222_p0, %p2216_p6 }
  0xde   : > { %692 = vrot.lane.b32.xlu0 %v2680_v1, %s2317_s27  ;;  %829 = vrot.lane.b32.xlu1 %v2699_v4, %s2317_s27 }
  0xe2   : > { %703 = vrot.lane.b32.xlu0 %v2680_v1, %s2320_s28  ;;  %849 = vrot.lane.b32.xlu1 %v2709_v5, %s2320_s28 }
  0xe6   : > { %717 = vrot.lane.b32.xlu0 %v2714_v6, %s2318_s7  ;;  %874 = vrot.lane.b32.xlu1 %v2719_v7, %s2318_s7 }
  0xea   : > { %733 = vrot.lane.b32.xlu0 %v2678_v0, %s2317_s27  ;;  %998 = vrot.lane.b32.xlu1 %v2727_v8, %s2318_s7 }
  0xee   : > { %744 = vrot.lane.b32.xlu0 %v2678_v0, %s2320_s28  ;;  %1115 = vrot.lane.b32.xlu1 %v2734_v9, %s2318_s7 }
  0xf2   : > { %795 = vrot.lane.b32.xlu0 %v2709_v5, %s2318_s7  ;;  %1198 = vrot.lane.b32.xlu1 %v2742_v10, %s2318_s7 }
  0xf6   : > { %827 = vrot.lane.b32.xlu0 %v2709_v5, %s2317_s27  ;;  %1315 = vrot.lane.b32.xlu1 %v2749_v11, %s2318_s7 }
  0xfa   : > { %851 = vrot.lane.b32.xlu0 %v2699_v4, %s2320_s28  ;;  %1398 = vrot.lane.b32.xlu1 %v2757_v12, %s2318_s7 }
  0xfe   : > { %890 = vrot.lane.b32.xlu0 %v2709_v5, %s2317_s27 }
 0x102   : > { %901 = vrot.lane.b32.xlu0 %v2709_v5, %s2320_s28 }
 0x106   : > { %915 = vrot.lane.b32.xlu0 %v2768_v13, %s2318_s7 }
 0x10a   : > { %931 = vrot.lane.b32.xlu0 %v2699_v4, %s2317_s27 }
 0x10e   : > { %942 = vrot.lane.b32.xlu0 %v2699_v4, %s2320_s28 }
 0x112   : > { %995 = vrot.lane.b32.xlu0 %v2778_v14, %s2318_s7 }
 0x116   : > { %1074 = vrot.lane.b32.xlu0 %v2783_v15, %s2318_s7 }
 0x11a   : > { %1195 = vrot.lane.b32.xlu0 %v2789_v16, %s2318_s7 }
 0x11e   : > { %1274 = vrot.lane.b32.xlu0 %v2794_v17, %s2318_s7 }
 0x122   : > { %1395 = vrot.lane.b32.xlu0 %v2800_v18, %s2318_s7 }
 0x126   : > { %1474 = vrot.lane.b32.xlu0 %v2805_v19, %s2318_s7 }
 0x140   : > { %v632_v20 = vpop.permute.xlu1 %631  ;;  %v598_v21 = vpop.permute.xlu0 %597 }
 0x141   : > { %v599_v22 = vsel %vm596_vm0, %v598_v21, %v2680_v1  ;;  %v636_v31 = vsub.f32 %v2678_v0, %v632_v20 }
 0x142   : > { %603 = vrot.lane.b32.xlu1 %v599_v22, %s2318_s7 }
 0x144   : > { %v652_v23 = vpop.permute.xlu1 %651  ;;  %v601_v24 = vpop.permute.xlu0 %600 }
 0x145   : > { %v602_v25 = vsel %vm596_vm0, %v601_v24, %v2678_v0  ;;  %v657_v34 = vsub.f32 %v2680_v1, %v652_v23 }
 0x146   : > { %605 = vrot.lane.b32.xlu1 %v602_v25, %s2318_s7  ;;  %v2870_v25 = vrot.slane %v2757_v12, 6 }
 0x148   : > { %v630_v26 = vpop.permute.xlu0 %629  ;;  %v2815_v27 = vpop.permute.xlu1 %676 }
 0x149   : > { %v635_v44 = vsub.f32 %v2680_v1, %v630_v26  ;;  %v678_v62 = vsel %vm596_vm0, %v2815_v27, %v2693_v3 }
 0x14c   : > { %v2817_v28 = vpop.permute.xlu0 %653  ;;  %v799_v29 = vpop.permute.xlu1 %798 }
 0x14d   : > { %v800_v30 = vsel %vm596_vm0, %v799_v29, %v2699_v4 }
 0x14e   : > { %803 = vrot.lane.b32.xlu1 %v800_v30, %s2318_s7 }
 0x150   : > { %v693_v32 = vpop.permute.xlu0 %692  ;;  %v830_v46 = vpop.permute.xlu1 %829 }
 0x151   : > { %v695_v37 = vsub.f32 %v2680_v1, %v693_v32  ;;  %v834_v49 = vsub.f32 %v2699_v4, %v830_v46 }
 0x152   : > { %644 = vperm.xlu1 %2006, %v636_v31  }
 0x154   : > { %v704_v33 = vpop.permute.xlu0 %703  ;;  %v850_v51 = vpop.permute.xlu1 %849 }
 0x155   : > { %v706_v39 = vsub.f32 %v2680_v1, %v704_v33  ;;  %v855_v53 = vsub.f32 %v2709_v5, %v850_v51 }
 0x156   : > { %2007 = vset.pattern.permute.xlu1 %v3624_v35 }
 0x157   : > { %661 = vperm.xlu1 %2007, %v657_v34  }
 0x158   : > { %v718_v36 = vpop.permute.xlu0 %717  ;;  %v875_v63 = vpop.permute.xlu1 %874 }
 0x159   : > { %v719_v20 = vsel %vm596_vm0, %v718_v36, %v2714_v6  ;;  %v876_v21 = vsel %vm596_vm0, %v875_v63, %v2719_v7 }
 0x15b   : > { %2008 = vset.pattern.permute.xlu1 %v3627_v2 }
 0x15c   : > { %v734_v38 = vpop.permute.xlu0 %733  ;;  %698 = vperm.xlu1 %2008, %v695_v37   ;;  %v999_v22 = vpop.permute.xlu1 %998 }
 0x15d   : > { %v736_v41 = vsub.f32 %v2678_v0, %v734_v38  ;;  %v1000_v24 = vsel %vm596_vm0, %v999_v22, %v2727_v8 }
 0x160   : > { %v745_v40 = vpop.permute.xlu0 %744  ;;  %2009 = vset.pattern.permute.xlu1 %v3624_v35  ;;  %v1116_v29 = vpop.permute.xlu1 %1115 }
 0x161   : > { %709 = vperm.xlu1 %2009, %v706_v39   ;;  %v747_v47 = vsub.f32 %v2678_v0, %v745_v40 }
 0x164   : > { %v796_v42 = vpop.permute.xlu0 %795  ;;  %v1199_v30 = vpop.permute.xlu1 %1198 }
 0x165   : > { %2010 = vset.pattern.permute.xlu1 %v3627_v2  ;;  %v797_v43 = vsel %vm596_vm0, %v796_v42, %v2709_v5 }
 0x166   : > { %801 = vrot.lane.b32.xlu0 %v797_v43, %s2318_s7  ;;  %739 = vperm.xlu1 %2010, %v736_v41  }
 0x168   : > { %v828_v45 = vpop.permute.xlu0 %827  ;;  %v1316_v31 = vpop.permute.xlu1 %1315 }
 0x169   : > { %v833_v48 = vsub.f32 %v2709_v5, %v828_v45 }
 0x16a   : > { %639 = vperm.xlu0 %2005, %v635_v44   ;;  %2011 = vset.pattern.permute.xlu1 %v3624_v35 }
 0x16b   : > { %750 = vperm.xlu1 %2011, %v747_v47  }
 0x16c   : > { %v2839_v50 = vpop.permute.xlu0 %851  ;;  %v2881_v32 = vpop.permute.xlu1 %1398 }
 0x16e   : > { %837 = vperm.xlu0 %2005, %v833_v48  }
 0x16f   : > { %2012 = vset.pattern.permute.xlu1 %v3627_v2 }
 0x170   : > { %842 = vperm.xlu1 %2012, %v834_v49   ;;  %v891_v52 = vpop.permute.xlu0 %890 }
 0x171   : > { %v893_v55 = vsub.f32 %v2709_v5, %v891_v52 }
 0x174   : > { %2013 = vset.pattern.permute.xlu1 %v3624_v35  ;;  %v902_v54 = vpop.permute.xlu0 %901 }
 0x175   : > { %859 = vperm.xlu1 %2013, %v855_v53   ;;  %v904_v58 = vsub.f32 %v2709_v5, %v902_v54 }
 0x178   : > { %v916_v56 = vpop.permute.xlu0 %915 }
 0x179   : > { %2014 = vset.pattern.permute.xlu1 %v3627_v2  ;;  %v917_v23 = vsel %vm596_vm0, %v916_v56, %v2768_v13 }
 0x17a   : > { %896 = vperm.xlu1 %2014, %v893_v55  }
 0x17c   : > { %v932_v57 = vpop.permute.xlu0 %931 }
 0x17d   : > { %v934_v59 = vsub.f32 %v2699_v4, %v932_v57 }
 0x17e   : > { %2015 = vset.pattern.permute.xlu1 %v3624_v35 }
 0x17f   : > { %907 = vperm.xlu1 %2015, %v904_v58  }
 0x180   : > { %v943_v60 = vpop.permute.xlu0 %942 }
 0x181   : > { %v945_v61 = vsub.f32 %v2699_v4, %v943_v60 }
 0x183   : > { %2016 = vset.pattern.permute.xlu1 %v3627_v2 }
 0x184   : > { %937 = vperm.xlu1 %2016, %v934_v59   ;;  %v996_v26 = vpop.permute.xlu0 %995 }
 0x185   : > { %v997_v27 = vsel %vm596_vm0, %v996_v26, %v2778_v14 }
 0x186   : > { %1001 = vrot.lane.b32.xlu0 %v997_v27, %s2318_s7 }
 0x188   : > { %2017 = vset.pattern.permute.xlu1 %v3624_v35  ;;  %v1075_v44 = vpop.permute.xlu0 %1074 }
 0x189   : > { %948 = vperm.xlu1 %2017, %v945_v61  }
 0x18a   : > { %1027 = vrot.lane.b32.xlu0 %v2778_v14, %s2317_s27 }
 0x18c   : > { %v2903_v46 = vpop.permute.xlu0 %1195 }
 0x18d   : > { %679 = vrot.lane.b32.xlu1 %v678_v62, %s2318_s7 }
 0x18e   : > { %2018 = vset.pattern.permute.xlu1 %v3627_v2 }
 0x190   : > { %v2907_v48 = vpop.permute.xlu0 %1274 }
 0x191   : > { %720 = vrot.lane.b32.xlu1 %v719_v20, %s2318_s7 }
 0x194   : > { %v2911_v51 = vpop.permute.xlu0 %1395 }
 0x195   : > { %877 = vrot.lane.b32.xlu1 %v876_v21, %s2318_s7 }
 0x198   : > { %v2915_v53 = vpop.permute.xlu0 %1474 }
 0x199   : > { %918 = vrot.lane.b32.xlu1 %v917_v23, %s2318_s7 }
 0x19d   : > { %1003 = vrot.lane.b32.xlu1 %v1000_v24, %s2318_s7 }
 0x1a1   : > { %1515 = vrot.lane.b32.xlu1 %v2870_v25, %s2318_s7 }
 0x1a5   : > { %1029 = vrot.lane.b32.xlu1 %v2727_v8, %s2317_s27 }
 0x1b4   : > { %v2883_v33 = vpop.permute.xlu1 %603 }
 0x1b8   : > { %v606_v34 = vpop.permute.xlu1 %605 }
 0x1c0   : > { %v2885_v36 = vpop.permute.xlu1 %803 }
 0x1d1   : > { %v2887_v37 = vpop.permute.xlu1 %644 }
 0x1d6   : > { %v2889_v38 = vpop.permute.xlu1 %661 }
 0x1d8   : > { %v2919_v56 = vpop.permute.xlu0 %801 }
 0x1db   : > { %v2891_v39 = vpop.permute.xlu1 %698 }
 0x1e0   : > { %v2893_v40 = vpop.permute.xlu1 %709 }
 0x1e5   : > { %v2895_v41 = vpop.permute.xlu1 %739 }
 0x1e9   : > { %v2921_v58 = vpop.permute.xlu0 %639 }
 0x1ea   : > { %v2897_v42 = vpop.permute.xlu1 %750 }
 0x1ed   : > { %v2923_v60 = vpop.permute.xlu0 %837 }
 0x1ef   : > { %v2899_v43 = vpop.permute.xlu1 %842 }
 0x1f4   : > { %v2901_v45 = vpop.permute.xlu1 %859 }
 0x1f8   : > { %v2925_v62 = vpop.permute.xlu0 %1001 }
 0x1f9   : > { %v2905_v47 = vpop.permute.xlu1 %896 }
 0x1fc   : > { %v1028_v20 = vpop.permute.xlu0 %1027 }
 0x1fd   : > { %v1033_v21 = vsub.f32 %v2778_v14, %v1028_v20 }
 0x1fe   : > { %v2909_v49 = vpop.permute.xlu1 %907 }
 0x1ff   : > { %1037 = vperm.xlu0 %2005, %v1033_v21   ;;  %v1076_v21 = vsel %vm596_vm0, %v1075_v44, %v2783_v15  ;;  %v1117_v44 = vsel %vm596_vm0, %v1116_v29, %v2734_v9  ;;  %v608_v29 = vsel %vm596_vm0, %v606_v34, %v2678_v0 }
 0x203   : > { %v2913_v52 = vpop.permute.xlu1 %937  ;;  %1051 = vrot.lane.b32.xlu0 %v2727_v8, %s2320_s28 }
 0x208   : > { %v2917_v54 = vpop.permute.xlu1 %948 }
 0x20c   : > { %v680_v55 = vpop.permute.xlu1 %679 }
 0x20d   : > { %v2986_v34 = vsel %vm596_vm0, %v680_v55, %v2693_v3 }
 0x210   : > { %v721_v57 = vpop.permute.xlu1 %720 }
 0x214   : > { %v878_v59 = vpop.permute.xlu1 %877 }
 0x218   : > { %v919_v61 = vpop.permute.xlu1 %918 }
 0x21c   : > { %v1004_v63 = vpop.permute.xlu1 %1003 }
 0x220   : > { %v2928_v22 = vpop.permute.xlu1 %1515 }
 0x224   : > { %v1030_v23 = vpop.permute.xlu1 %1029 }
 0x225   : > { %v1034_v24 = vsub.f32 %v2727_v8, %v1030_v23  ;;  %v1200_v23 = vsel %vm596_vm0, %v1199_v30, %v2742_v10  ;;  %v806_v30 = vsel %vm596_vm0, %v2885_v36, %v2699_v4  ;;  %v2992_v36 = vsel %vm596_vm0, %v721_v57, %v2714_v6 }
 0x226   : > { %v3008_v6 = vsel %vm596_vm0, %v919_v61, %v2768_v13 }
 0x227   : > { %1042 = vperm.xlu1 %2018, %v1034_v24   ;;  %v1317_v24 = vsel %vm596_vm0, %v1316_v31, %v2749_v11  ;;  %v1006_v31 = vsel %vm596_vm0, %v1004_v63, %v2727_v8  ;;  %v724_v63 = vrot.slane %v2992_v36, 2  ;;  %v3629_v55 = vrot.slane %v3008_v6, 2 }
 0x22b   : > { %1049 = vrot.lane.b32.xlu1 %v2778_v14, %s2320_s28 }
 0x22c   : > { %2019 = vset.pattern.permute.xlu1 %v3624_v35 }
 0x2a6   : > { %v2936_v26 = vpop.permute.xlu1 %1042 }
 0x2aa   : > { %v1050_v27 = vpop.permute.xlu1 %1049 }
 0x2ab   : > { %v1055_v20 = vsub.f32 %v2778_v14, %v1050_v27  ;;  %v683_v27 = vrot.slane %v2986_v34, 7  ;;  %v3124_v34 = vpop.permute.xlu0 %1037 }
 0x2ad   : > { %1059 = vperm.xlu1 %2019, %v1055_v20   ;;  %v3000_v20 = vsel %vm596_vm0, %v878_v59, %v2719_v7 }
 0x2ae   : > { %v881_v3 = vrot.slane %v3000_v20, 7 }
 0x2b1   : > { %1077 = vrot.lane.b32.xlu1 %v1076_v21, %s2318_s7 }
 0x2b2   : > { %2020 = vset.pattern.permute.xlu1 %v3627_v2 }
 0x2b5   : > { %1090 = vrot.lane.b32.xlu1 %v2778_v14, %s2317_s27 }
 0x2b9   : > { %1227 = vrot.lane.b32.xlu1 %v2789_v16, %s2317_s27 }
 0x2bd   : > { %1229 = vrot.lane.b32.xlu1 %v2742_v10, %s2317_s27 }
 0x2c1   : > { %1249 = vrot.lane.b32.xlu1 %v2789_v16, %s2320_s28 }
 0x2c5   : > { %1290 = vrot.lane.b32.xlu1 %v2789_v16, %s2317_s27 }
 0x2c9   : > { %1101 = vrot.lane.b32.xlu1 %v2778_v14, %s2320_s28 }
 0x2cd   : > { %1301 = vrot.lane.b32.xlu1 %v2789_v16, %s2320_s28 }
 0x2d1   : > { %1118 = vrot.lane.b32.xlu1 %v1117_v44, %s2318_s7 }
 0x2d5   : > { %1203 = vrot.lane.b32.xlu1 %v1200_v23, %s2318_s7  ;;  %v1400_v23 = vsel %vm596_vm0, %v2881_v32, %v2757_v12 }
 0x2d9   : > { %1318 = vrot.lane.b32.xlu1 %v1317_v24, %s2318_s7  ;;  %v1517_v24 = vsel %vm596_vm0, %v2928_v22, %v2870_v25 }
 0x2dd   : > { %1429 = vrot.lane.b32.xlu1 %v2757_v12, %s2317_s27 }
 0x2e1   : > { %1451 = vrot.lane.b32.xlu1 %v2757_v12, %s2320_s28 }
 0x2e5   : > { %1531 = vrot.lane.b32.xlu1 %v2757_v12, %s2317_s27 }
 0x2e9   : > { %613 = vrot.lane.b32.xlu1 %v608_v29, %s2322_s9 }
 0x2ed   : > { %621 = vrot.lane.b32.xlu1 %v608_v29, %s2323_s20 }
 0x2f1   : > { %811 = vrot.lane.b32.xlu1 %v806_v30, %s2322_s9 }
 0x2f5   : > { %819 = vrot.lane.b32.xlu1 %v806_v30, %s2323_s20 }
 0x2f9   : > { %1011 = vrot.lane.b32.xlu1 %v1006_v31, %s2322_s9 }
 0x2fd   : > { %1019 = vrot.lane.b32.xlu1 %v1006_v31, %s2323_s20 }
 0x301   : > { %688 = vrot.lane.b32.xlu1 %v683_v27, %s2323_s20 }
 0x305   : > { %729 = vrot.lane.b32.xlu1 %v724_v63, %s2323_s20 }
 0x309   : > { %886 = vrot.lane.b32.xlu1 %v881_v3, %s2323_s20 }
 0x30d   : > { %927 = vrot.lane.b32.xlu1 %v3629_v55, %s2323_s20 }
 0x32c   : > { %v3017_v7 = vpop.permute.xlu1 %1059 }
 0x330   : > { %v1078_v57 = vpop.permute.xlu1 %1077 }
 0x331   : > { %v3021_v59 = vsel %vm596_vm0, %v1078_v57, %v2783_v15 }
 0x332   : > { %v3626_v13 = vrot.slane %v3021_v59, 7 }
 0x334   : > { %1082 = vrot.lane.b32.xlu1 %v3626_v13, %s2322_s9  ;;  %v1091_v61 = vpop.permute.xlu1 %1090 }
 0x335   : > { %v1093_v21 = vsub.f32 %v2778_v14, %v1091_v61 }
 0x337   : > { %1096 = vperm.xlu0 %2005, %v1093_v21   ;;  %v1197_v21 = vsel %vm596_vm0, %v2903_v46, %v2789_v16 }
 0x338   : > { %1542 = vrot.lane.b32.xlu1 %v2757_v12, %s2320_s28  ;;  %v1228_v44 = vpop.permute.xlu1 %1227 }
 0x339   : > { %v1233_v29 = vsub.f32 %v2789_v16, %v1228_v44 }
 0x33b   : > { %1131 = vrot.lane.b32.xlu0 %v2727_v8, %s2317_s27 }
 0x33c   : > { %1403 = vrot.lane.b32.xlu1 %v1400_v23, %s2318_s7  ;;  %v1230_v15 = vpop.permute.xlu1 %1229  ;;  %v1276_v23 = vsel %vm596_vm0, %v2907_v48, %v2794_v17 }
 0x33d   : > { %v1234_v32 = vsub.f32 %v2742_v10, %v1230_v15 }
 0x33f   : > { %1251 = vrot.lane.b32.xlu0 %v2742_v10, %s2320_s28 }
 0x340   : > { %1518 = vrot.lane.b32.xlu1 %v1517_v24, %s2318_s7  ;;  %v1250_v30 = vpop.permute.xlu1 %1249 }
 0x341   : > { %v1255_v57 = vsub.f32 %v2789_v16, %v1250_v30  ;;  %v607_v30 = vsel %vm596_vm0, %v2883_v33, %v2680_v1 }
 0x343   : > { %1331 = vrot.lane.b32.xlu0 %v2742_v10, %s2317_s27 }
 0x344   : > { %v3046_v31 = vpop.permute.xlu1 %1290  ;;  %1237 = vperm.xlu1 %2020, %v1233_v29  }
 0x347   : > { %1142 = vrot.lane.b32.xlu0 %v2727_v8, %s2320_s28 }
 0x348   : > { %v3050_v22 = vpop.permute.xlu1 %1101  ;;  %1242 = vperm.xlu1 %2020, %v1234_v32  }
 0x34b   : > { %1342 = vrot.lane.b32.xlu0 %v2742_v10, %s2320_s28 }
 0x34c   : > { %v3055_v61 = vpop.permute.xlu1 %1301  ;;  %2021 = vset.pattern.permute.xlu1 %v3624_v35  ;;  %v805_v35 = vsel %vm596_vm0, %v2919_v56, %v2709_v5 }
 0x34d   : > { %1259 = vperm.xlu1 %2021, %v1255_v57  }
 0x34f   : > { %1201 = vrot.lane.b32.xlu0 %v1197_v21, %s2318_s7 }
 0x350   : > { %v1119_v44 = vpop.permute.xlu1 %1118 }
 0x353   : > { %1277 = vrot.lane.b32.xlu0 %v1276_v23, %s2318_s7 }
 0x354   : > { %v1204_v15 = vpop.permute.xlu1 %1203 }
 0x357   : > { %1427 = vrot.lane.b32.xlu0 %v2800_v18, %s2317_s27 }
 0x358   : > { %v1319_v24 = vpop.permute.xlu1 %1318 }
 0x35b   : > { %1449 = vrot.lane.b32.xlu0 %v2800_v18, %s2320_s28 }
 0x35c   : > { %v3070_v29 = vpop.permute.xlu1 %1429 }
 0x35f   : > { %1490 = vrot.lane.b32.xlu0 %v2800_v18, %s2317_s27 }
 0x360   : > { %v3074_v46 = vpop.permute.xlu1 %1451 }
 0x363   : > { %1501 = vrot.lane.b32.xlu0 %v2800_v18, %s2320_s28 }
 0x364   : > { %v3078_v48 = vpop.permute.xlu1 %1531 }
 0x367   : > { %611 = vrot.lane.b32.xlu0 %v607_v30, %s2322_s9 }
 0x368   : > { %v614_v32 = vpop.permute.xlu1 %613 }
 0x369   : > { %v618_v57 = vadd.f32 %v614_v32, %v2678_v0 }
 0x36b   : > { %619 = vrot.lane.b32.xlu0 %v607_v30, %s2323_s20  ;;  %v1005_v30 = vsel %vm596_vm0, %v2925_v62, %v2778_v14  ;;  %v1476_v62 = vsel %vm596_vm0, %v2915_v53, %v2805_v19 }
 0x36c   : > { %v622_v21 = vpop.permute.xlu1 %621 }
 0x36d   : > { %v3086_v23 = vadd.f32 %v622_v21, %v618_v57 }
 0x36f   : > { %809 = vrot.lane.b32.xlu0 %v805_v35, %s2322_s9 }
 0x370   : > { %v812_v13 = vpop.permute.xlu1 %811 }
 0x371   : > { %v816_v2 = vadd.f32 %v812_v13, %v2699_v4 }
 0x373   : > { %817 = vrot.lane.b32.xlu0 %v805_v35, %s2323_s20  ;;  %v1397_v35 = vsel %vm596_vm0, %v2911_v51, %v2800_v18  ;;  %v1293_v51 = vsub.f32 %v2789_v16, %v3046_v31 }
 0x374   : > { %v820_v33 = vpop.permute.xlu1 %819 }
 0x375   : > { %v3094_v55 = vadd.f32 %v820_v33, %v816_v2  ;;  %v3656_v2 = vrot.slane %v3008_v6, 2  ;;  %v1120_v33 = vsel %vm596_vm0, %v1119_v44, %v2734_v9  ;;  %v1320_v9 = vsel %vm596_vm0, %v1319_v24, %v2749_v11 }
 0x377   : > { %1009 = vrot.lane.b32.xlu0 %v1005_v30, %s2322_s9 }
 0x378   : > { %v1012_v32 = vpop.permute.xlu1 %1011 }
 0x379   : > { %v1016_v57 = vadd.f32 %v1012_v32, %v2727_v8  ;;  %v3658_v32 = vrot.slane %v3021_v59, 7 }
 0x37b   : > { %1017 = vrot.lane.b32.xlu0 %v1005_v30, %s2323_s20  ;;  %v3657_v30 = vmov 1  }
 0x37c   : > { %v1020_v56 = vpop.permute.xlu1 %1019 }
 0x37d   : > { %v3102_v21 = vadd.f32 %v1020_v56, %v1016_v57  ;;  %v1122_v56 = vrot.slane %v1120_v33, 2  ;;  %v856_v33 = vsub.f32 %v2699_v4, %v2839_v50  ;;  %v1434_v50 = vsub.f32 %v2757_v12, %v3070_v29 }
 0x37e   : > { %v1304_v29 = vsub.f32 %v2789_v16, %v3055_v61 }
 0x37f   : > { %684 = vrot.lane.b32.xlu0 %v683_v27, %s2322_s9  ;;  %v1052_v27 = vpop.permute.xlu0 %1051 }
 0x383   : > { %725 = vrot.lane.b32.xlu0 %v724_v63, %s2322_s9 }
 0x387   : > { %882 = vrot.lane.b32.xlu0 %v881_v3, %s2322_s9 }
 0x38b   : > { %923 = vrot.lane.b32.xlu0 %v3656_v2, %s2322_s9  ;;  %v3659_v2 = vmov 14  }
 0x38f   : > { %1401 = vrot.lane.b32.xlu0 %v1397_v35, %s2318_s7  ;;  %v1206_v35 = vsel %vm596_vm0, %v1204_v15, %v2742_v10 }
 0x393   : > { %1477 = vrot.lane.b32.xlu0 %v1476_v62, %s2318_s7  ;;  %v1322_v62 = vrot.slane %v1320_v9, 2  ;;  %v1104_v9 = vsub.f32 %v2778_v14, %v3050_v22 }
 0x3b6   : > { %v3126_v36 = vpop.permute.xlu0 %1096 }
 0x3ba   : > { %v1132_v63 = vpop.permute.xlu0 %1131 }
 0x3bb   : > { %v1134_v20 = vsub.f32 %v2727_v8, %v1132_v63 }
 0x3bd   : > { %1137 = vperm.xlu0 %2005, %v1134_v20  }
 0x3be   : > { %v1252_v3 = vpop.permute.xlu0 %1251 }
 0x3bf   : > { %v1256_v6 = vsub.f32 %v2742_v10, %v1252_v3 }
 0x3c1   : > { %1264 = vperm.xlu1 %2021, %v1256_v6   ;;  %1296 = vperm.xlu0 %2005, %v1293_v51   ;;  %v3156_v51 = vpop.permute.xlu1 %688 }
 0x3c2   : > { %v1332_v53 = vpop.permute.xlu0 %1331 }
 0x3c3   : > { %v1334_v13 = vsub.f32 %v2742_v10, %v1332_v53 }
 0x3c5   : > { %2022 = vset.pattern.permute.xlu1 %v3657_v30  ;;  %1086 = vrot.lane.b32.xlu0 %v3658_v32, %s2323_s20  ;;  %v3162_v53 = vpop.permute.xlu1 %729 }
 0x3c6   : > { %v1143_v57 = vpop.permute.xlu0 %1142  ;;  %1337 = vperm.xlu1 %2022, %v1334_v13  }
 0x3c9   : > { %1123 = vrot.lane.b32.xlu0 %v1122_v56, %s2322_s9 }
 0x3ca   : > { %v1343_v31 = vpop.permute.xlu0 %1342  ;;  %2023 = vset.pattern.permute.xlu1 %v3659_v2 }
 0x3cb   : > { %v1345_v11 = vsub.f32 %v2742_v10, %v1343_v31  ;;  %v3170_v31 = vpop.permute.xlu1 %886 }
 0x3cd   : > { %1219 = vrot.lane.b32.xlu0 %v1206_v35, %s2323_s20 }
 0x3ce   : > { %v1202_v44 = vpop.permute.xlu0 %1201 }
 0x3cf   : > { %v1205_v59 = vsel %vm596_vm0, %v1202_v44, %v2789_v16 }
 0x3d0   : > { %1209 = vrot.lane.b32.xlu1 %v1205_v59, %s2322_s9 }
 0x3d1   : > { %1323 = vrot.lane.b32.xlu0 %v1322_v62, %s2322_s9 }
 0x3d2   : > { %v1278_v63 = vpop.permute.xlu0 %1277 }
 0x3d3   : > { %v1279_v20 = vsel %vm596_vm0, %v1278_v63, %v2794_v17  ;;  %v658_v17 = vsub.f32 %v2678_v0, %v2817_v28  ;;  %v1056_v28 = vsub.f32 %v2727_v8, %v1052_v27  ;;  %v1145_v27 = vsub.f32 %v2727_v8, %v1143_v57 }
 0x3d4   : > { %v1281_v3 = vrot.slane %v1279_v20, 7  ;;  %1211 = vrot.lane.b32.xlu1 %v1206_v35, %s2322_s9  ;;  %v585_v20 = vlaneseq }
 0x3d6   : > { %v1428_v15 = vpop.permute.xlu0 %1427  ;;  %1286 = vrot.lane.b32.xlu0 %v1281_v3, %s2323_s20 }
 0x3d7   : > { %v1433_v24 = vsub.f32 %v2800_v18, %v1428_v15 }
 0x3d8   : > { %1348 = vperm.xlu1 %2023, %v1345_v11   ;;  %v3186_v11 = vand.u32 127, %v585_v20 }
 0x3da   : > { %v1450_v6 = vpop.permute.xlu0 %1449  ;;  %1437 = vperm.xlu0 %2005, %v1433_v24   ;;  %vm590_vm1 = vcmp.eq.s32.totalorder %v3186_v11, 0  ;;  %vm591_vm2 = vcmp.eq.s32.totalorder %v3186_v11, 15 }
 0x3db   : > { %v1455_v22 = vsub.f32 %v2800_v18, %v1450_v6 }
 0x3dc   : > { %1217 = vrot.lane.b32.xlu1 %v1205_v59, %s2323_s20  ;;  %v3180_v59 = vpop.permute.xlu1 %927 }
 0x3dd   : > { %2025 = vset.pattern.permute.xlu1 %v3657_v30 }
 0x3de   : > { %v1491_v13 = vpop.permute.xlu0 %1490  ;;  %2024 = vset.pattern.permute.xlu0 %v3659_v2 }
 0x3df   : > { %666 = vperm.xlu0 %2024, %v658_v17   ;;  %v845_v17 = vsel %vm590_vm1, %v2923_v60, 0.0  ;;  %v1493_v6 = vsub.f32 %v2800_v18, %v1491_v13 }
 0x3e0   : > { %1282 = vrot.lane.b32.xlu1 %v1281_v3, %s2322_s9 }
 0x3e2   : > { %v3168_v32 = vpop.permute.xlu0 %1501 }
 0x3e3   : > { %864 = vperm.xlu0 %2024, %v856_v33  }
 0x3e4   : > { %1127 = vrot.lane.b32.xlu1 %v1122_v56, %s2323_s20  ;;  %v3183_v56 = vpop.permute.xlu1 %1082 }
 0x3e6   : > { %v612_v35 = vpop.permute.xlu0 %611 }
 0x3e7   : > { %1064 = vperm.xlu0 %2024, %v1056_v28   ;;  %v617_v44 = vadd.f32 %v612_v35, %v2680_v1  ;;  %v1456_v28 = vsub.f32 %v2757_v12, %v3074_v46 }
 0x3e8   : > { %1327 = vrot.lane.b32.xlu1 %v1322_v62, %s2323_s20  ;;  %v1543_v33 = vpop.permute.xlu1 %1542 }
 0x3e9   : > { %v1545_v46 = vsub.f32 %v2757_v12, %v1543_v33 }
 0x3ea   : > { %v620_v63 = vpop.permute.xlu0 %619 }
 0x3eb   : > { %v625_v3 = vadd.f32 %v620_v63, %v617_v44  ;;  %1107 = vperm.xlu0 %2024, %v1104_v9   ;;  %v1534_v9 = vsub.f32 %v2757_v12, %v3078_v48  ;;  %v647_v48 = vsel %vm590_vm1, %v2921_v58, 0.0  ;;  %v742_v58 = vsel %vm590_vm1, %v2895_v41, 0.0 }
 0x3ec   : > { %1442 = vperm.xlu1 %2025, %v1434_v50   ;;  %v1404_v50 = vpop.permute.xlu1 %1403  ;;  %v867_v41 = vsel %vm591_vm2, %v2901_v45, 0.0 }
 0x3ed   : > { %v1406_v13 = vsel %vm596_vm0, %v1404_v50, %v2757_v12 }
 0x3ee   : > { %v810_v62 = vpop.permute.xlu0 %809 }
 0x3ef   : > { %1148 = vperm.xlu0 %2024, %v1145_v27   ;;  %v815_v15 = vadd.f32 %v810_v62, %v2709_v5 }
 0x3f0   : > { %2026 = vset.pattern.permute.xlu1 %v3659_v2  ;;  %v1519_v62 = vpop.permute.xlu1 %1518 }
 0x3f1   : > { %1459 = vperm.xlu1 %2026, %v1455_v22  }
 0x3f2   : > { %v818_v24 = vpop.permute.xlu0 %817 }
 0x3f3   : > { %v823_v57 = vadd.f32 %v818_v24, %v815_v15  ;;  %1307 = vperm.xlu0 %2024, %v1304_v29   ;;  %v669_v15 = vsel %vm591_vm2, %v2889_v38, 0.0  ;;  %v1520_v24 = vsel %vm596_vm0, %v1519_v62, %v2870_v25 }
 0x3f4   : > { %v1522_v38 = vrot.slane %v1520_v24, 2 }
 0x3f5   : > { %v847_v35 = vadd.f32 %v845_v17, %v823_v57  ;;  %2027 = vset.pattern.permute.xlu1 %v3657_v30  ;;  %v649_v30 = vadd.f32 %v647_v48, %v625_v3 }
 0x3f6   : > { %v1010_v61 = vpop.permute.xlu0 %1009  ;;  %1496 = vperm.xlu1 %2027, %v1493_v6  }
 0x3f7   : > { %1464 = vperm.xlu0 %2024, %v1456_v28   ;;  %v1015_v44 = vadd.f32 %v1010_v61, %v2778_v14  ;;  %v3241_v61 = vadd.f32 %v867_v41, %v847_v35  ;;  %v1504_v35 = vsub.f32 %v2800_v18, %v3168_v32 }
 0x3f9   : > { %v978_v45 = vrot.slane %v3241_v61, 2 }
 0x3fa   : > { %v1018_v63 = vpop.permute.xlu0 %1017  ;;  %1537 = vperm.xlu1 %2027, %v1534_v9  }
 0x3fb   : > { %v3204_v60 = vadd.f32 %v1018_v63, %v1015_v44 }
 0x3fe   : > { %v3209_v27 = vpop.permute.xlu0 %684  ;;  %1411 = vrot.lane.b32.xlu1 %v1406_v13, %s2322_s9 }
 0x3ff   : > { %2028 = vset.pattern.permute.xlu1 %v3659_v2  ;;  %v3223_v2 = vadd.f32 %v669_v15, %v649_v30  ;;  %v1085_v15 = vadd.f32 %v3183_v56, %v2778_v14  ;;  %v687_v14 = vadd.f32 %v3209_v27, %v2680_v1  ;;  %v701_v1 = vsel %vm590_vm1, %v2891_v39, 0.0 }
 0x400   : > { %v1046_v39 = vsel %vm590_vm1, %v2936_v26, 0.0 }
 0x401   : > { %v782_v33 = vrot.slane %v3223_v2, 2  ;;  %v3331_v26 = vadd.f32 %v1046_v39, %v3102_v21 }
 0x402   : > { %v726_v22 = vpop.permute.xlu0 %725  ;;  %1548 = vperm.xlu1 %2028, %v1545_v46  }
 0x403   : > { %v728_v29 = vadd.f32 %v726_v22, %v2678_v0  ;;  %v753_v0 = vsel %vm591_vm2, %v2897_v42, 0.0  ;;  %v940_v42 = vsel %vm590_vm1, %v2913_v52, 0.0 }
 0x405   : > { %v732_v57 = vadd.f32 %v3162_v53, %v728_v29 }
 0x406   : > { %v883_v3 = vpop.permute.xlu0 %882  ;;  %1419 = vrot.lane.b32.xlu1 %v1406_v13, %s2323_s20 }
 0x407   : > { %v743_v17 = vadd.f32 %v742_v58, %v732_v57  ;;  %v1099_v58 = vsel %vm590_vm1, %v3126_v36, 0.0  ;;  %v885_v56 = vadd.f32 %v883_v3, %v2709_v5  ;;  %v648_v36 = vsel %vm590_vm1, %v2887_v37, 0.0 }
 0x408   : > { %v712_v5 = vsel %vm591_vm2, %v2893_v40, 0.0  ;;  %v846_v37 = vsel %vm590_vm1, %v2899_v43, 0.0  ;;  %v910_v3 = vsel %vm591_vm2, %v2909_v49, 0.0  ;;  %v691_v40 = vadd.f32 %v3156_v51, %v687_v14 }
 0x409   : > { %v754_v25 = vadd.f32 %v753_v0, %v743_v17  ;;  %v1067_v43 = vsel %vm591_vm2, %v3017_v7, 0.0  ;;  %v650_v49 = vadd.f32 %v648_v36, %v3086_v23 }
 0x40a   : > { %v924_v6 = vpop.permute.xlu0 %923  ;;  %1523 = vrot.lane.b32.xlu1 %v1522_v38, %s2322_s9  ;;  %v702_v23 = vadd.f32 %v701_v1, %v691_v40 }
 0x40b   : > { %v3235_v53 = vsub.f32 %v754_v25, %v782_v33  ;;  %v926_v28 = vadd.f32 %v924_v6, %v2699_v4  ;;  %v951_v4 = vsel %vm591_vm2, %v2917_v54, 0.0  ;;  %v1238_v54 = vpop.permute.xlu1 %1237  ;;  %v3280_v25 = vshrl.u32 %v585_v20, 7 }
 0x40c   : > { %v1245_v7 = vsel %vm590_vm1, %v1238_v54, 0.0  ;;  %v762_v54 = vrot.slane %v3223_v2, 1 }
 0x40d   : > { %v930_v9 = vadd.f32 %v3180_v59, %v926_v28  ;;  %v3295_v20 = vadd.s32 8, %v3280_v25  ;;  %vm757_vm4 = vcmp.lt.s32.totalorder %v3280_v25, 1  ;;  %vm764_vm5 = vcmp.lt.s32.totalorder %v3280_v25, 7 }
 0x40e   : > { %v1402_v44 = vpop.permute.xlu0 %1401  ;;  %1527 = vrot.lane.b32.xlu1 %v1522_v38, %s2323_s20  ;;  %vm592_vm6 = vcmp.eq.s32.totalorder %v3280_v25, 0 }
 0x40f   : > { %v941_v50 = vadd.f32 %v940_v42, %v930_v9  ;;  %v1405_v63 = vsel %vm596_vm0, %v1402_v44, %v2800_v18  ;;  %v1243_v30 = vpop.permute.xlu1 %1242  ;;  %v1045_v9 = vsel %vm590_vm1, %v3124_v34, 0.0  ;;  %v899_v34 = vsel %vm590_vm1, %v2905_v47, 0.0 }
 0x410   : > { %1409 = vrot.lane.b32.xlu0 %v1405_v63, %s2322_s9  ;;  %v1047_v27 = vadd.f32 %v1045_v9, %v3204_v60  ;;  %v3323_v60 = vsub.s32 6, %v3280_v25  ;;  %v889_v44 = vadd.f32 %v3170_v31, %v885_v56  ;;  %vm595_vm3 = vcmp.eq.s32.totalorder %v3295_v20, 15 }
 0x411   : > { %v952_v59 = vadd.f32 %v951_v4, %v941_v50  ;;  %v1246_v31 = vsel %vm590_vm1, %v1243_v30, 0.0 }
 0x412   : > { %v1478_v13 = vpop.permute.xlu0 %1477  ;;  %v3334_v51 = vadd.f32 %v1067_v43, %v1047_v27  ;;  %v788_v21 = vrot.slane %v3235_v53, %v3323_v60 }
 0x413   : > { %v3257_v52 = vsub.f32 %v952_v59, %v978_v45  ;;  %v1479_v46 = vsel %vm596_vm0, %v1478_v13, %v2805_v19  ;;  %v1260_v62 = vpop.permute.xlu1 %1259  ;;  %v900_v59 = vadd.f32 %v899_v34, %v889_v44 }
 0x414   : > { %1507 = vperm.xlu0 %2024, %v1504_v35   ;;  %v1481_v48 = vrot.slane %v1479_v46, 7  ;;  %v1267_v4 = vsel %vm591_vm2, %v1260_v62, 0.0  ;;  %v3350_v46 = vsub.s32 1, %v3280_v25  ;;  %v1153_v53 = vrot.slane %v3334_v51, 7 }
 0x415   : > { %v984_v30 = vrot.slane %v3257_v52, %v3323_v60  ;;  %v1178_v14 = vrot.slane %v3334_v51, 2  ;;  %v790_v52 = vsel %vm595_vm3, %v788_v21, 0.0  ;;  %v911_v56 = vadd.f32 %v910_v3, %v900_v59 }
 0x417   : > { %v3371_v1 = vsel %vm595_vm3, %v984_v30, 0.0 }
 0x418   : > { %1417 = vrot.lane.b32.xlu0 %v1405_v63, %s2323_s20  ;;  %v848_v63 = vadd.f32 %v846_v37, %v3094_v55 }
 0x41c   : > { %1482 = vrot.lane.b32.xlu0 %v1481_v48, %s2322_s9 }
 0x420   : > { %1486 = vrot.lane.b32.xlu0 %v1481_v48, %s2323_s20  ;;  %v755_v48 = vrot.slane %v3223_v2, 7 }
 0x43c   : > { %v3264_v22 = vpop.permute.xlu0 %1137 }
 0x440   : > { %v3266_v32 = vpop.permute.xlu0 %1296  ;;  %v1265_v29 = vpop.permute.xlu1 %1264 }
 0x444   : > { %v1087_v24 = vpop.permute.xlu0 %1086 }
 0x445   : > { %v1089_v19 = vadd.f32 %v1087_v24, %v1085_v15  ;;  %v3270_v57 = vpop.permute.xlu1 %1337  ;;  %v953_v15 = vrot.slane %v3241_v61, 7  ;;  %v959_v24 = vrot.slane %v3241_v61, 1 }
 0x446   : > { %v1340_v27 = vsel %vm590_vm1, %v3270_v57, 0.0 }
 0x447   : > { %v3275_v17 = vadd.f32 %v1099_v58, %v1089_v19  ;;  %v1159_v19 = vrot.slane %v3334_v51, 1  ;;  %v713_v58 = vadd.f32 %v712_v5, %v702_v23 }
 0x448   : > { %v3277_v0 = vpop.permute.xlu0 %1123 }
 0x449   : > { %v1210_v38 = vpop.permute.xlu1 %1209  ;;  %v1126_v34 = vadd.f32 %v3277_v0, %v2727_v8 }
 0x44a   : > { %v1215_v55 = vadd.f32 %v1210_v38, %v2789_v16  ;;  %v1268_v38 = vsel %vm591_vm2, %v1265_v29, 0.0  ;;  %v1140_v29 = vsel %vm590_vm1, %v3264_v22, 0.0 }
 0x44c   : > { %v1220_v33 = vpop.permute.xlu0 %1219 }
 0x44d   : > { %v1212_v6 = vpop.permute.xlu1 %1211 }
 0x44e   : > { %v1216_v41 = vadd.f32 %v1212_v6, %v2742_v10 }
 0x450   : > { %v3282_v28 = vpop.permute.xlu0 %1323  ;;  %v1224_v47 = vadd.f32 %v1220_v33, %v1216_v41 }
 0x451   : > { %v1326_v3 = vadd.f32 %v3282_v28, %v2742_v10 }
 0x452   : > { %v1248_v35 = vadd.f32 %v1246_v31, %v1224_v47 }
 0x454   : > { %v3297_v42 = vpop.permute.xlu0 %1286  ;;  %v3365_v41 = vadd.f32 %v1268_v38, %v1248_v35 }
 0x456   : > { %v1360_v57 = vrot.slane %v3365_v41, 1 }
 0x457   : > { %v3326_v50 = vpop.permute.xlu1 %1348 }
 0x458   : > { %v1351_v59 = vsel %vm591_vm2, %v3326_v50, 0.0 }
 0x459   : > { %v3342_v45 = vpop.permute.xlu0 %1437 }
 0x45b   : > { %v1218_v13 = vpop.permute.xlu1 %1217 }
 0x45c   : > { %v1223_v62 = vadd.f32 %v1218_v13, %v1215_v55 }
 0x45e   : > { %v1247_v33 = vadd.f32 %v1245_v7, %v1223_v62  ;;  %v667_v6 = vpop.permute.xlu0 %666 }
 0x45f   : > { %v670_v36 = vsel %vm591_vm2, %v667_v6, 0.0  ;;  %v1283_v9 = vpop.permute.xlu1 %1282 }
 0x460   : > { %v3376_v5 = vadd.f32 %v1267_v4, %v1247_v33  ;;  %v672_v37 = vadd.f32 %v670_v36, %v650_v49  ;;  %v1285_v39 = vadd.f32 %v1283_v9, %v2789_v16  ;;  %v1354_v49 = vrot.slane %v3365_v41, 7 }
 0x462   : > { %v1353_v40 = vrot.slane %v3376_v5, 7  ;;  %v1359_v43 = vrot.slane %v3376_v5, 1  ;;  %v756_v22 = vrot.slane %v672_v37, 7  ;;  %v763_v44 = vrot.slane %v672_v37, 1  ;;  %v865_v47 = vpop.permute.xlu0 %864 }
 0x463   : > { %v770_v7 = vrot.slane %v672_v37, 6  ;;  %v868_v8 = vsel %vm591_vm2, %v865_v47, 0.0  ;;  %v1128_v10 = vpop.permute.xlu1 %1127  ;;  %v3406_v35 = vadd.f32 %v3297_v42, %v1285_v39 }
 0x464   : > { %v758_v16 = vsel %vm757_vm4, %v755_v48, %v756_v22  ;;  %v759_v0 = vsel %vm757_vm4, %v756_v22, %v755_v48  ;;  %v765_v28 = vsel %vm764_vm5, %v762_v54, %v763_v44  ;;  %v766_v31 = vsel %vm764_vm5, %v763_v44, %v762_v54 }
 0x465   : > { %v760_v4 = vadd.f32 %v759_v0, %v3223_v2  ;;  %v761_v23 = vadd.f32 %v758_v16, %v672_v37  ;;  %v772_v55 = vsub.f32 %v713_v58, %v770_v7  ;;  %v870_v21 = vadd.f32 %v868_v8, %v848_v63 }
 0x466   : > { %v1065_v13 = vpop.permute.xlu0 %1064  ;;  %v1355_v48 = vsel %vm757_vm4, %v1353_v40, %v1354_v49  ;;  %v1362_v2 = vsel %vm764_vm5, %v1360_v57, %v1359_v43  ;;  %v1130_v42 = vadd.f32 %v1128_v10, %v1126_v34  ;;  %v1378_v10 = vrot.slane %v3376_v5, 2 }
 0x467   : > { %v767_v63 = vadd.f32 %v765_v28, %v760_v4  ;;  %v768_v50 = vadd.f32 %v766_v31, %v761_v23  ;;  %v954_v54 = vrot.slane %v870_v21, 7  ;;  %v1328_v30 = vpop.permute.xlu1 %1327  ;;  %v776_v62 = vrot.slane %v772_v55, %v3350_v46 }
 0x468   : > { %v960_v58 = vrot.slane %v870_v21, 1  ;;  %v966_v38 = vrot.slane %v870_v21, 6  ;;  %v1068_v33 = vsel %vm591_vm2, %v1065_v13, 0.0  ;;  %v1141_v28 = vadd.f32 %v1140_v29, %v1130_v42 }
 0x469   : > { %v792_v6 = vadd.f32 %v790_v52, %v768_v50  ;;  %v955_v36 = vsel %vm757_vm4, %v953_v15, %v954_v54  ;;  %v956_v9 = vsel %vm757_vm4, %v954_v54, %v953_v15  ;;  %v1070_v37 = vadd.f32 %v1068_v33, %v3331_v26 }
 0x46a   : > { %v957_v39 = vadd.f32 %v956_v9, %v3241_v61  ;;  %v958_v34 = vadd.f32 %v955_v36, %v870_v21  ;;  %v961_v22 = vsel %vm764_vm5, %v959_v24, %v960_v58  ;;  %v962_v44 = vsel %vm764_vm5, %v960_v58, %v959_v24  ;;  %v1108_v47 = vpop.permute.xlu0 %1107 }
 0x46b   : > { %v968_v7 = vsub.f32 %v911_v56, %v966_v38  ;;  %v1154_v52 = vrot.slane %v1070_v37, 7  ;;  %v1160_v8 = vrot.slane %v1070_v37, 1  ;;  %v3434_v16 = vpop.permute.xlu1 %1442  ;;  %v1358_v26 = vadd.f32 %v1355_v48, %v3365_v41 }
 0x46c   : > { %v963_v15 = vadd.f32 %v961_v22, %v957_v39  ;;  %v964_v0 = vadd.f32 %v962_v44, %v958_v34  ;;  %v1330_v61 = vadd.f32 %v1328_v30, %v1326_v3  ;;  %v777_v24 = vsel %vm592_vm6, %v776_v62, 0.0 }
 0x46d   : > { %v1155_v31 = vsel %vm757_vm4, %v1153_v53, %v1154_v52  ;;  %v1110_v56 = vsel %vm591_vm2, %v1108_v47, 0.0  ;;  %v1364_v55 = vadd.f32 %v1362_v2, %v1358_v26  ;;  %v779_v48 = vadd.f32 %v777_v24, %v767_v63 }
 0x46e   : > { %v988_v4 = vadd.f32 %v3371_v1, %v964_v0  ;;  %v1158_v23 = vadd.f32 %v1155_v31, %v1070_v37  ;;  %v1341_v21 = vadd.f32 %v1340_v27, %v1330_v61  ;;  %v1149_v13 = vpop.permute.xlu0 %1148  ;;  %v1111_v29 = vadd.f32 %v1110_v56, %v3275_v17 }
 0x46f   : > { %v1156_v3 = vsel %vm757_vm4, %v1154_v52, %v1153_v53  ;;  %v1161_v50 = vsel %vm764_vm5, %v1159_v19, %v1160_v8  ;;  %v794_v54 = vmul.f32 0.11111111, %v792_v6  ;;  %v972_v63 = vrot.slane %v968_v7, %v3350_v46 }
 0x470   : > { %v990_v42 = vmul.f32 0.11111111, %v988_v4  ;;  %v1352_v1 = vadd.f32 %v1351_v59, %v1341_v21  ;;  %v1157_v2 = vadd.f32 %v1156_v3, %v3334_v51  ;;  %v3456_v27 = vpop.permute.xlu1 %1459  ;;  %v1166_v17 = vrot.slane %v1070_v37, 6 }
 0x471   : > { %v1151_v30 = vsel %vm591_vm2, %v1149_v13, 0.0  ;;  %v1162_v53 = vsel %vm764_vm5, %v1160_v8, %v1159_v19  ;;  %v1299_v6 = vsel %vm590_vm1, %v3266_v32, 0.0  ;;  %v793_v34 = vmul.f32 0.11111111, %v779_v48 }
 0x472   : > { %v3465_v62 = vmul.f32 %v990_v42, %v794_v54  ;;  %v1594_v58 = vmul.f32 %v990_v42, %v990_v42  ;;  %v1380_v38 = vsub.f32 %v1352_v1, %v1378_v10  ;;  %v1163_v59 = vadd.f32 %v1161_v50, %v1157_v2  ;;  %v1308_v33 = vpop.permute.xlu0 %1307 }
 0x473   : > { %v1168_v36 = vsub.f32 %v1111_v29, %v1166_v17  ;;  %v1152_v9 = vadd.f32 %v1151_v30, %v1141_v28  ;;  %v1164_v37 = vadd.f32 %v1162_v53, %v1158_v23  ;;  %v1592_v22 = vmul.f32 %v794_v54, %v794_v54 }
 0x474   : > { %v1384_v39 = vrot.slane %v1380_v38, %v3323_v60  ;;  %v1300_v44 = vadd.f32 %v1299_v6, %v3406_v35  ;;  %v973_v7 = vsel %vm592_vm6, %v972_v63, 0.0  ;;  %v1310_v32 = vsel %vm591_vm2, %v1308_v33, 0.0 }
 0x475   : > { %v1172_v19 = vrot.slane %v1168_v36, %v3350_v46  ;;  %v1180_v47 = vsub.f32 %v1152_v9, %v1178_v14  ;;  %v3479_v52 = vpop.permute.xlu1 %1496  ;;  %v1614_v10 = vadd.f32 %v1594_v58, %v1592_v22  ;;  %v975_v0 = vadd.f32 %v973_v7, %v963_v15 }
 0x476   : > { %v1386_v8 = vsel %vm595_vm3, %v1384_v39, 0.0  ;;  %v1366_v35 = vrot.slane %v3365_v41, 6  ;;  %v1311_v61 = vadd.f32 %v1310_v32, %v1300_v44  ;;  %v1591_v31 = vmul.f32 %v793_v34, %v793_v34  ;;  %v1465_v39 = vpop.permute.xlu0 %1464 }
 0x477   : > { %v1388_v26 = vadd.f32 %v1386_v8, %v1364_v55  ;;  %v1173_v51 = vsel %vm592_vm6, %v1172_v19, 0.0  ;;  %v1184_v14 = vrot.slane %v1180_v47, %v3323_v60  ;;  %v989_v24 = vmul.f32 0.11111111, %v975_v0 }
 0x478   : > { %v1175_v28 = vadd.f32 %v1173_v51, %v1163_v59  ;;  %v1356_v56 = vsel %vm757_vm4, %v1354_v49, %v1353_v40  ;;  %v1361_v55 = vsel %vm764_vm5, %v1359_v43, %v1360_v57  ;;  %v1368_v29 = vsub.f32 %v1311_v61, %v1366_v35 }
 0x479   : > { %v1390_v15 = vmul.f32 0.11111111, %v1388_v26  ;;  %v1186_v4 = vsel %vm595_vm3, %v1184_v14, 0.0  ;;  %v1357_v23 = vadd.f32 %v1356_v56, %v3376_v5  ;;  %v1538_v21 = vpop.permute.xlu1 %1537  ;;  %v1593_v3 = vmul.f32 %v989_v24, %v989_v24 }
 0x47a   : > { %v1189_v13 = vmul.f32 0.11111111, %v1175_v28  ;;  %v1188_v48 = vadd.f32 %v1186_v4, %v1164_v37  ;;  %v1372_v42 = vrot.slane %v1368_v29, %v3350_v46  ;;  %v3503_v63 = vmul.f32 %v989_v24, %v793_v34 }
 0x47b   : > { %v1600_v50 = vsub.f32 %v1390_v15, %v1594_v58  ;;  %v1363_v40 = vadd.f32 %v1361_v55, %v1357_v23  ;;  %v1613_v1 = vadd.f32 %v1593_v3, %v1591_v31  ;;  %v1616_v53 = vadd.f32 0.0001, %v1614_v10 }
 0x47c   : > { %v1597_v49 = vsub.f32 %v1189_v13, %v1591_v31  ;;  %v1190_v54 = vmul.f32 0.11111111, %v1188_v48  ;;  %v1373_v5 = vsel %vm592_vm6, %v1372_v42, 0.0  ;;  %v1446_v32 = vsel %vm590_vm1, %v3434_v16, 0.0 }
 0x47d   : > { %v1412_v2 = vpop.permute.xlu1 %1411  ;;  %v1375_v43 = vadd.f32 %v1373_v5, %v1363_v40  ;;  %v1615_v6 = vadd.f32 0.0001, %v1613_v1  ;;  %v1468_v51 = vsel %vm591_vm2, %v1465_v39, 0.0  ;;  %v1445_v61 = vsel %vm590_vm1, %v3342_v45, 0.0 }
 0x47e   : > { %v1598_v41 = vsub.f32 %v1190_v54, %v1592_v22  ;;  %v1416_v22 = vadd.f32 %v1412_v2, %v2757_v12  ;;  %v1540_v28 = vsel %vm590_vm1, %v1538_v21, 0.0  ;;  %v1499_v54 = vsel %vm590_vm1, %v3479_v52, 0.0 }
 0x47f   : > { %v1389_v17 = vmul.f32 0.11111111, %v1375_v43 }
 0x480   : > { %v1618_v57 = vadd.f32 %v1600_v50, %v1598_v41 }
 0x481   : > { %v1549_v30 = vpop.permute.xlu1 %1548  ;;  %v1599_v58 = vsub.f32 %v1389_v17, %v1593_v3 }
 0x482   : > { %v1620_v38 = vadd.f32 0.0009, %v1618_v57  ;;  %v1410_v44 = vpop.permute.xlu0 %1409  ;;  %v1551_v4 = vsel %vm591_vm2, %v1549_v30, 0.0 }
 0x483   : > { %v1617_v33 = vadd.f32 %v1599_v58, %v1597_v49  ;;  %v1415_v0 = vadd.f32 %v1410_v44, %v2800_v18 }
 0x484   : > { %v1622_v59 = vmul.f32 %v1620_v38, %v1616_v53 }
 0x485   : > { %v1619_v36 = vadd.f32 0.0009, %v1617_v33  ;;  %v1420_v9 = vpop.permute.xlu1 %1419 }
 0x486   : > { %v1424_v19 = vadd.f32 %v1420_v9, %v1416_v22  ;;  %2029 = vrcp.f32 %v1622_v59 }
 0x487   : > { %v1621_v37 = vmul.f32 %v1619_v36, %v1615_v6 }
 0x488   : > { %v1448_v10 = vadd.f32 %v1446_v32, %v1424_v19  ;;  %v1603_v19 = vmul.f32 2.0, %v3503_v63 }
 0x489   : > { %v1524_v34 = vpop.permute.xlu1 %1523  ;;  %2031 = vrcp.f32 %v1621_v37 }
 0x48a   : > { %v1526_v8 = vadd.f32 %v1524_v34, %v2757_v12  ;;  %v1470_v31 = vadd.f32 %v1468_v51, %v1448_v10  ;;  %v1467_v12 = vsel %vm591_vm2, %v3456_v27, 0.0  ;;  %v1605_v32 = vadd.f32 0.0001, %v1603_v19 }
 0x48c   : > { %v1554_v23 = vrot.slane %v1470_v31, 7  ;;  %v1560_v3 = vrot.slane %v1470_v31, 1  ;;  %v1566_v30 = vrot.slane %v1470_v31, 6 }
 0x48d   : > { %v1528_v47 = vpop.permute.xlu1 %1527 }
 0x48e   : > { %v1530_v35 = vadd.f32 %v1528_v47, %v1526_v8 }
 0x490   : > { %v1541_v16 = vadd.f32 %v1540_v28, %v1530_v35  ;;  %v2030_v44 = vpop.eup %2029 }
 0x492   : > { %v1552_v55 = vadd.f32 %v1551_v4, %v1541_v16 }
 0x493   : > { %v1508_v7 = vpop.permute.xlu0 %1507 }
 0x494   : > { %v1510_v5 = vsel %vm591_vm2, %v1508_v7, 0.0 }
 0x497   : > { %v1418_v26 = vpop.permute.xlu0 %1417 }
 0x498   : > { %v1423_v14 = vadd.f32 %v1418_v26, %v1415_v0  ;;  %v2032_v0 = vpop.eup %2031 }
 0x49a   : > { %v1447_v24 = vadd.f32 %v1445_v61, %v1423_v14 }
 0x49b   : > { %v1483_v56 = vpop.permute.xlu0 %1482 }
 0x49c   : > { %v1469_v15 = vadd.f32 %v1467_v12, %v1447_v24  ;;  %v1485_v29 = vadd.f32 %v1483_v56, %v2800_v18 }
 0x49e   : > { %v1553_v13 = vrot.slane %v1469_v15, 7  ;;  %v1559_v48 = vrot.slane %v1469_v15, 1  ;;  %v1578_v45 = vrot.slane %v1469_v15, 2 }
 0x49f   : > { %v1487_v21 = vpop.permute.xlu0 %1486 }
 0x4a0   : > { %v1555_v50 = vsel %vm757_vm4, %v1553_v13, %v1554_v23  ;;  %v1580_v40 = vsub.f32 %v1552_v55, %v1578_v45  ;;  %v1489_v27 = vadd.f32 %v1487_v21, %v1485_v29  ;;  %v1562_v42 = vsel %vm764_vm5, %v1560_v3, %v1559_v48 }
 0x4a1   : > { %v1558_v49 = vadd.f32 %v1555_v50, %v1470_v31  ;;  %v1556_v18 = vsel %vm757_vm4, %v1554_v23, %v1553_v13  ;;  %v1561_v33 = vsel %vm764_vm5, %v1559_v48, %v1560_v3 }
 0x4a2   : > { %v1584_v1 = vrot.slane %v1580_v40, %v3323_v60  ;;  %v1500_v41 = vadd.f32 %v1499_v54, %v1489_v27  ;;  %v1557_v52 = vadd.f32 %v1556_v18, %v1469_v15  ;;  %v1604_v60 = vmul.f32 2.0, %v3465_v62 }
 0x4a3   : > { %v1564_v2 = vadd.f32 %v1562_v42, %v1558_v49 }
 0x4a4   : > { %v1586_v43 = vsel %vm595_vm3, %v1584_v1, 0.0  ;;  %v1511_v17 = vadd.f32 %v1510_v5, %v1500_v41  ;;  %v1563_v6 = vadd.f32 %v1561_v33, %v1557_v52  ;;  %v1606_v39 = vadd.f32 0.0001, %v1604_v60 }
 0x4a5   : > { %v1588_v57 = vadd.f32 %v1586_v43, %v1564_v2 }
 0x4a6   : > { %v1568_v38 = vsub.f32 %v1511_v17, %v1566_v30 }
 0x4a7   : > { %v1590_v53 = vmul.f32 0.11111111, %v1588_v57 }
 0x4a8   : > { %v1572_v11 = vrot.slane %v1568_v38, %v3350_v46 }
 0x4a9   : > { %v1602_v58 = vsub.f32 %v1590_v53, %v3465_v62 }
 0x4aa   : > { %v1573_v20 = vsel %vm592_vm6, %v1572_v11, 0.0 }
 0x4ab   : > { %v1608_v36 = vmul.f32 2.0, %v1602_v58  ;;  %v1575_v9 = vadd.f32 %v1573_v20, %v1563_v6 }
 0x4ad   : > { %v1610_v59 = vadd.f32 0.0009, %v1608_v36  ;;  %v1589_v34 = vmul.f32 0.11111111, %v1575_v9 }
 0x4af   : > { %v1612_v22 = vmul.f32 %v1610_v59, %v1606_v39  ;;  %v1601_v62 = vsub.f32 %v1589_v34, %v3503_v63 }
 0x4b1   : > { %v1626_v47 = vmul.f32 %v2030_v44, %v1612_v22  ;;  %v1607_v46 = vmul.f32 2.0, %v1601_v62 }
 0x4b3   : > { %v1628_v7 = vsub.f32 1.0, %v1626_v47  ;;  %v1609_v8 = vadd.f32 0.0009, %v1607_v46 }
 0x4b5   : > { %v1630_v25 = vmul.f32 0.5, %v1628_v7  ;;  %v1611_v10 = vmul.f32 %v1609_v8, %v1605_v32 }
 0x4b7   : > { %v1632_v37 = vmax.f32 %v1630_v25, 0.0  ;;  %v1625_v35 = vmul.f32 %v2032_v0, %v1611_v10 }
 0x4b9   : > { %v1634_v26 = vmin.f32 %v1632_v37, 1.0  ;;  %v1627_v51 = vsub.f32 1.0, %v1625_v35 }
 0x4bb   : > { %1637 = vst.msk [vmem:[%s537_s30 + $0x8] sm:$0xff] %vm1635_vm7, %v1634_v26  ;;  %v1629_v14 = vmul.f32 0.5, %v1627_v51 }
 0x4bd   : > { %v1631_v63 = vmax.f32 %v1629_v14, 0.0 }
 0x4bf   : > { %v1633_v61 = vmin.f32 %v1631_v63, 1.0 }
 0x4c1   : > { %1636 = vst.msk [vmem:[%s537_s30] sm:$0xff] %vm1635_vm7, %v1633_v61 }
 0x4c2   : > { %2226 = shalt.err (!%p2223_p10)
}
 0x4c3   : > { %s2227_s1 = scalar_lea.hbm %s3554_s13, 256  ;;  %s2231_s15 = scalar_lea.hbm %s3610_s6, 2048 }
 0x4c4   : > { %p2228_p8 = scmp.ne.s32.totalorder %s3554_s13, %s2227_s1  ;;  %p2232_p11 = scmp.lt.u32.totalorder %s3554_s13, %s3610_s6 }
 0x4c5   : > { %p2233_p7 = scmp.lt.u32.totalorder %s2231_s15, %s2227_s1  ;;  %p2235_p12 = scmp.lt.u32.totalorder %s2227_s1, %s3554_s13 }
 0x4c6   : > { %p2229_p9 = pnand %p2228_p8, %p3660_p5 }
 0x4c7   : > { %p2234_p2 = por %p2233_p7, %p2232_p11 }
 0x4c8   : > { %p2230_p3 = pneg %p2229_p9 }
 0x4c9   : > { %p2236_p1 = por %p2235_p12, %p2234_p2 }
 0x4cb   : > { %p2237_p6 = pnand %p2236_p1, %p2230_p3 }
 0x4cd   : > { %2240 = shalt.err (!%p2237_p6)
}
 0x4ce   : > { %s2325_s25 = smov 128   ;;  %s2326_s27 = smov 8  }
 0x4cf   : > { %1919 = dma.vmem_to_hbm [thread:$0]  (%p3660_p5), %s3556_s3, 256, %s3554_s13, %s1639_s17, %s2325_s25, %s2325_s25, %s2326_s27  }
 0x4d0 PF: > { %s3661_s7 = sld [smem:[#allocation22_spill]]  ;;  %s3662_s28 = sld [smem:[#allocation19_spill]] }
 0x4d1   : > { %s3663_s9 = sld [smem:[#allocation25_spill]] }
 0x4d6   : > { %p1945_p4 = scmp.ge.s32.totalorder %s3661_s7, 2  ;;  %s1669_s20 = sand.u32 1, %s3662_s28  }
 0x4d7   : > { %p3664_p13 = scmp.ne.s32.totalorder %s3663_s9, 0  ;;  %s1670_s30 = scalar_lea.sflag [#allocation4], %s1669_s20 }
 0x4d9   : > { %p1941_p0 = pnand %p1945_p4, %p3664_p13 }
 0x4db   : > { %2282 = dma.done.wait (!%p1941_p0), %s1670_s30, 256  }
 0x4dc   : > { %2284 = vsyncadd (!%p1941_p0), %s1670_s30, 4294967040  ;;  %s31_s26 = sadd.s32 1, %s3661_s7   ;;  %s3665_s14 = sld [smem:[#allocation20_spill]] }
 0x4dd   : > { %p28_p10 = scmp.ge.s32.totalorder %s31_s26, 10   ;;  %s3666_s23 = sld [smem:[#allocation24_spill]] }
 0x4de   : > { %s3667_s24 = sld [smem:[#allocation21_spill]]  ;;  %s3668_s25 = sld [smem:[#allocation23_spill]] }
 0x4df   : > { %s3669_s21 = smov %s2291_s22  ;;  %30 = sbr.rel (!%p28_p10) target bundleno = 15 (0xf), region = 150 }
 0x4e2   : > { %s3670_s22 = smov %s3665_s14 }
 0x4e6   :  { %1675 = vsyncpa [#allocation3], 1 }
 0x4e7   :  { %1677 = vsyncpa [#allocation3 + $0x1], 1 }
 0x4e8   :  { %1678 = vsyncpa [#allocation6], 1 }
 0x4e9   :  { %1680 = vsyncpa [#allocation6 + $0x1], 1 }
 0x4ea   :  { %1681 = vsyncpa [#allocation9], 1 }
 0x4eb   :  { %1683 = vsyncpa [#allocation9 + $0x1], 1 }
 0x4ec   :  { %1684 = vsyncpa [#allocation12], 1 }
 0x4ed   :  { %1686 = vsyncpa [#allocation12 + $0x1], 1 }
 0x4ee   :  { %1687 = vsyncpa [#allocation4], 1 }
 0x4ef   :  { %1689 = vsyncpa [#allocation4 + $0x1], 1 }

</bundles_post_ra>
